<compile_context>
chip_gen: v6e
topology: v6e:2x2x1
jax: 0.10.0
libtpu: 0.0.40
codegen_flags: <defaults>
</compile_context>

<pallas_src>
import jax
import jax.numpy as jnp
from jax import lax
from jax.experimental import pallas as pl
from jax.experimental.pallas import tpu as pltpu


def linear_relu_kernel(x_ref, w_ref, b_ref, o_ref):
    # x_ref: (M, K), w_ref: (tn, K)  -> contract on K (dim 1 of both): (M, tn).
    y = lax.dot_general(
        x_ref[...],
        w_ref[...],
        dimension_numbers=(((1,), (1,)), ((), ())),
        preferred_element_type=jnp.float32,
    )
    o_ref[...] = jnp.maximum(y + b_ref[...], 0.0).astype(o_ref.dtype)


def linear_relu(x2d, weight, bias):
    """x2d: (M, K) f32, weight: (N, K) f32 (native torch layout), bias: (N,)."""
    M, K = x2d.shape
    N = weight.shape[0]
    b2d = bias.reshape(1, N)

    # 2-way split over N (dual-TC on v7x) when it stays lane-aligned;
    # otherwise fall back to a single full block.
    if N % (2 * 128) == 0:
        tn = N // 2
    else:
        tn = N
    grid = (N // tn,)

    bytes_accessed = 4 * (M * K + N * K + N + M * N)  # f32 in + out
    return pl.pallas_call(
        linear_relu_kernel,
        out_shape=jax.ShapeDtypeStruct((M, N), x2d.dtype),
        grid_spec=pl.GridSpec(
            grid=grid,
            in_specs=[
                # x: full (M, K) block, invariant across the grid -> fetched once.
                pl.BlockSpec((M, K), lambda j: (0, 0)),
                # W: (tn, K) row slab per grid point (native (N_out, K) layout).
                pl.BlockSpec((tn, K), lambda j: (j, 0)),
                # bias: lane-dense (1, tn) slab.
                pl.BlockSpec((1, tn), lambda j: (0, j)),
            ],
            out_specs=pl.BlockSpec((M, tn), lambda j: (0, j)),
        ),
        compiler_params=pltpu.CompilerParams(
            dimension_semantics=("parallel",),
        ),
        cost_estimate=pl.CostEstimate(
            flops=2 * M * K * N,
            transcendentals=0,
            bytes_accessed=bytes_accessed,
        ),
    )(x2d, weight, b2d)


@jax.jit
def model_forward(x, weight, bias):
    """x: (B, S, D). weight: (D_out, D_in) as in torch Linear. bias: (D_out,)."""
    B, S, D = x.shape
    x2d = x.reshape(B * S, D)
    y2d = linear_relu(x2d, weight, bias)
    return y2d.reshape(B, S, weight.shape[0])


if __name__ == "__main__":
    key = jax.random.PRNGKey(0)
    kx, kw, kb = jax.random.split(key, 3)

    B, S, D = 32, 4, 768
    x = jax.random.normal(kx, (B, S, D), dtype=jnp.float32)

    # Deterministic parameter init (mimicking torch.nn.Linear's uniform bound).
    bound = 1.0 / jnp.sqrt(jnp.float32(D))
    weight = jax.random.uniform(kw, (D, D), jnp.float32, -bound, bound)
    bias = jax.random.uniform(kb, (D,), jnp.float32, -bound, bound)

    y = model_forward(x, weight, bias)
    jax.block_until_ready(y)

    # Reference check against plain JAX (f32 accumulation, highest precision so
    # both sides follow comparable MXU f32 paths).
    x2d = x.reshape(B * S, D)
    y_ref2d = lax.dot_general(
        x2d,
        weight,
        dimension_numbers=(((1,), (1,)), ((), ())),
        precision=lax.Precision.HIGHEST,
        preferred_element_type=jnp.float32,
    ) + bias
    y_ref = jnp.maximum(y_ref2d, 0.0).reshape(B, S, D)

    assert y.shape == (B, S, D)
    assert jnp.allclose(y, y_ref, atol=1e-3, rtol=1e-3)

    print("KERNEL_OK")
</pallas_src>

<mosaic_0001>
module attributes {stable_mosaic.version = 11 : i64} {
  func.func @linear_relu_kernel(%arg0: i32, %arg1: memref<128x768xf32, #tpu.memory_space<vmem>>, %arg2: memref<384x768xf32, #tpu.memory_space<vmem>>, %arg3: memref<1x384xf32, #tpu.memory_space<vmem>>, %arg4: memref<128x384xf32, #tpu.memory_space<vmem>>) attributes {dimension_semantics = [#tpu.dimension_semantics<parallel>], iteration_bounds = array<i64: 2>, scalar_prefetch = 0 : i64, scratch_operands = 0 : i64, tpu.core_type = #tpu.core_type<tc>, window_params = [{pipeline_mode = #tpu.pipeline_mode<synchronous>, transform_indices = @transform_0, window_bounds = array<i64: 128, 768>}, {transform_indices = @transform_1, window_bounds = array<i64: 384, 768>}, {transform_indices = @transform_2, window_bounds = array<i64: 1, 384>}, {transform_indices = @transform_3, window_bounds = array<i64: 128, 384>}]} {
    %c0 = arith.constant 0 : index
    %c0_0 = arith.constant 0 : index
    %0 = vector.load %arg1[%c0, %c0_0] : memref<128x768xf32, #tpu.memory_space<vmem>>, vector<128x768xf32>
    %c0_1 = arith.constant 0 : index
    %c0_2 = arith.constant 0 : index
    %1 = vector.load %arg2[%c0_1, %c0_2] : memref<384x768xf32, #tpu.memory_space<vmem>>, vector<384x768xf32>
    %cst = arith.constant dense<0.000000e+00> : vector<128x384xf32>
    %2 = tpu.matmul %0, %1, %cst {dimension_numbers = #tpu.dot_dimension_numbers<[1], [1], [0], [0], [0, 0, 1, 0], [], []>} : vector<128x768xf32>, vector<384x768xf32>, vector<128x384xf32> -> vector<128x384xf32>
    %c0_3 = arith.constant 0 : index
    %c0_4 = arith.constant 0 : index
    %3 = vector.load %arg3[%c0_3, %c0_4] : memref<1x384xf32, #tpu.memory_space<vmem>>, vector<1x384xf32>
    %4 = vector.broadcast %3 : vector<1x384xf32> to vector<128x384xf32>
    %5 = arith.addf %2, %4 : vector<128x384xf32>
    %cst_5 = arith.constant 0.000000e+00 : f32
    %6 = vector.broadcast %cst_5 : f32 to vector<128x384xf32>
    %7 = arith.maximumf %5, %6 : vector<128x384xf32>
    %c0_6 = arith.constant 0 : index
    %c0_7 = arith.constant 0 : index
    %8 = vector.load %arg4[%c0_6, %c0_7] : memref<128x384xf32, #tpu.memory_space<vmem>>, vector<128x384xf32>
    tpu.vector_store %arg4[%c0_6, %c0_7], %7 {strides = array<i32>} : memref<128x384xf32, #tpu.memory_space<vmem>>, vector<128x384xf32>,
    return
  }
  func.func @transform_0(%arg0: i32) -> (i32, i32) {
    %c0_i32 = arith.constant 0 : i32
    %c0_i32_0 = arith.constant 0 : i32
    %c0_i32_1 = arith.constant 0 : i32
    return %c0_i32, %c0_i32_0 : i32, i32
  }
  func.func @transform_1(%arg0: i32) -> (i32, i32) {
    %c0_i32 = arith.constant 0 : i32
    %c0_i32_0 = arith.constant 0 : i32
    return %arg0, %c0_i32 : i32, i32
  }
  func.func @transform_2(%arg0: i32) -> (i32, i32) {
    %c0_i32 = arith.constant 0 : i32
    %c0_i32_0 = arith.constant 0 : i32
    return %c0_i32, %arg0 : i32, i32
  }
  func.func @transform_3(%arg0: i32) -> (i32, i32) {
    %c0_i32 = arith.constant 0 : i32
    %c0_i32_0 = arith.constant 0 : i32
    return %c0_i32, %arg0 : i32, i32
  }
}

</mosaic_0001>

<bundles_post_ra>
// kernel: model_forward.1
= control target key start
LH: loop header
LB: loop body
LE: loop exit
PB: predicated region body
PF: predicated region fallthrough
CT: control target
= control target key end

     0   :  { %8 = vsyncpa [#allocation3], 0  ;;  %s3560_s0 = inlined_call_operand.vmem [shape: f32[128,768], index: 0, kind: input, shape index: {}]   ;;  %s3561_s1 = inlined_call_operand.hbm [shape: f32[768,768], index: 1, kind: input, shape index: {}]   ;;  %s3562_s2 = inlined_call_operand.vmem [shape: f32[1,768], index: 2, kind: input, shape index: {}]   ;;  %s3563_s3 = inlined_call_operand.vmem [shape: f32[128,768], index: 3, kind: output, shape index: {}]  }
   0x1   :  { %10 = vsyncpa [#allocation3 + $0x1], 0  ;;  %s1989_s12 = smov 0   ;;  %s1991_s13 = smov 0  }
   0x2   :  { %s1993_s14 = smov 0   ;;  %s1995_s15 = smov 0  }
   0x3 LB: > { %s2008_s16 = sadd.s32 4294967295, %s1964_s15   ;;  %s2011_s17 = sadd.s32 1, %s1964_s15   ;;  %s1964_s15 = sphi %s1995_s15, %s3659_s15   ;;  %s1960_s14 = sphi %s1993_s14, %s3658_s14   ;;  %s1956_s13 = sphi %s1991_s13, %s3657_s13   ;;  %s1952_s12 = sphi %s1989_s12, %s3656_s12  }
   0x4   : > { %s41_s18 = ssub.s32 %s1964_s15, %s2011_s17  ;;  %s44_s19 = sadd.s32 1, %s1960_s14 }
   0x5   : > { %p42_p0 = scmp.eq.s32.totalorder %s41_s18, 0  ;;  %p51_p1 = scmp.ne.s32.totalorder %s1960_s14, %s1956_s13 }
   0x6   : > { %p52_p2 = scmp.eq.s32.totalorder %s1964_s15, 0  ;;  %p57_p3 = scmp.ne.s32.totalorder %s1956_s13, %s1952_s12 }
   0x7   : > { %s2021_s20 = scalar_select %p42_p0, %s1960_s14, %s44_s19  }
   0x8   : > { %p53_p4 = por %p52_p2, %p51_p1  ;;  %p58_p5 = scmp.eq.s32.totalorder %s2008_s16, 0 }
   0x9   : > { %p107_p6 = scmp.eq.s32.totalorder %s2008_s16, 1  ;;  %p1865_p8 = scmp.lt.s32.totalorder %s1964_s15, 2 }
   0xa   : > { %p2025_p7 = por %p58_p5, %p57_p3  ;;  %s136_s23 = sand.u32 1, %s1960_s14  }
   0xb   : > { %p2030_p9 = por %p107_p6, %p51_p1  ;;  %s1855_s24 = smul.u32 2304, %s136_s23 }
   0xc   : > { %s3573_s21 = scalar_select %p2025_p7, 1, 0 }
   0xd   : > { %s3574_s22 = scalar_select %p2030_p9, 1, 0 }
   0xe   : > { %p2035_p10 = pnand %p1865_p8, %p53_p4  ;;  %s1866_s26 = smul.u32 36864, %s1964_s15 }
   0xf   : > { %s140_s27 = scalar_lea.vmem [#allocation2], %s1855_s24  ;;  %s2047_s5 = scalar_lea.sflag [#allocation3], %s136_s23 }
  0x10   : > { %s148_s28 = sshll.u32 %s140_s27, 4  ;;  %s2043_s4 = scalar_lea.hbm %s3561_s1, %s1866_s26  ;;  %s2045_s28 = int_to_ptr.vmem [resolvable:$true] %s148_s28 }
  0x11   : > { %s1902_s6 = scalar_lea.hbm %s2043_s4, 36864  ;;  %p1904_p12 = pneg %p2035_p10 }
  0x12   : > { %p1903_p11 = scmp.ne.s32.totalorder %s2043_s4, %s1902_s6  ;;  %s1907_s9 = scalar_lea.hbm %s3561_s1, 73728 }
  0x13   : > { %p1908_p1 = scmp.lt.s32.totalorder %s2043_s4, %s3561_s1  ;;  %p1909_p2 = scmp.lt.s32.totalorder %s1907_s9, %s1902_s6 }
  0x14   : > { %p1905_p13 = pnand %p1904_p12, %p1903_p11 }
  0x15   : > { %p1910_p3 = por %p1909_p2, %p1908_p1 }
  0x16   : > { %p1906_p0 = pneg %p1905_p13 }
  0x18   : > { %p1911_p4 = pnand %p1910_p3, %p1906_p0 }
  0x1a   : > { %1914 = shalt.err (!%p1911_p4)
}
  0x1b   : > { %s1915_s12 = scalar_lea.vmem %s2045_s28, 36864  ;;  %s1966_s18 = smov [#allocation2]  }
  0x1c   : > { %p1916_p5 = scmp.ne.s32.totalorder %s2045_s28, %s1915_s12  ;;  %s1920_s19 = sshll.u32 %s1966_s18, 4  ;;  %s1921_s19 = int_to_ptr.vmem [resolvable:$false] %s1920_s19 }
  0x1d   : > { %s1922_s23 = scalar_lea.vmem %s1921_s19, 73728  ;;  %p1923_p11 = scmp.lt.s32.totalorder %s2045_s28, %s1921_s19 }
  0x1e   : > { %p1918_p6 = pnand %p1916_p5, %p1904_p12  ;;  %p1924_p13 = scmp.lt.s32.totalorder %s1922_s23, %s1915_s12 }
  0x20   : > { %p1919_p8 = pneg %p1918_p6  ;;  %p1925_p9 = por %p1924_p13, %p1923_p11 }
  0x22   : > { %p1926_p7 = pnand %p1925_p9, %p1919_p8 }
  0x24   : > { %1929 = shalt.err (!%p1926_p7)
}
  0x25   : > { %s1967_s24 = smov 768   ;;  %s1968_s26 = smov 48  }
  0x26   : > { %1864 = dma.hbm_to_vmem [thread:$0]  (!%p2035_p10), %s2043_s4, 36864, %s2045_s28, %s2047_s5, %s1967_s24, %s1967_s24, %s1968_s26  }
  0x27   : > { %p1818_p12 = scmp.ge.s32.totalorder %s1964_s15, 1  ;;  %p164_p0 = scmp.lt.s32.totalorder %s1964_s15, 3 }
  0x29   : > { %p165_p1 = pnand %p1818_p12, %p164_p0 }
  0x2b   : > { %168 = sbr.rel (%p165_p1) target bundleno = 609 (0x261), region = 32 }
  0x30   : > { %s2071_s27 = sand.u32 1, %s1956_s13   ;;  %p3576_p7 = scmp.ne.s32.totalorder %s3573_s21, 0 }
  0x31   : > { %s1857_s29 = smul.u32 2304, %s2071_s27  ;;  %s171_s30 = scalar_lea.sflag [#allocation3], %s2071_s27 }
  0x33   : > { %s2075_s6 = scalar_lea.vmem [#allocation2], %s1857_s29 }
  0x34   : > { %1947 = dma.done.wait (%p3576_p7), %s171_s30, 36864  }
  0x35   : > { %1949 = vsyncadd (%p3576_p7), %s171_s30, 4294930432  ;;  %v394_v0 = vld [vmem:[%s2075_s6 + $0x2d8] sm:$0xff]  ;;  %v396_v1 = vld [vmem:[%s2075_s6 + $0x2e8] sm:$0xff]  ;;  %s201_s26 = smul.u32 3, %s2008_s16  ;;  %p3655_p10 = scmp.ne.s32.totalorder %s3574_s22, 0 }
  0x36   : > { %v393_v2 = vld [vmem:[%s2075_s6 + $0x2d0] sm:$0xff]  ;;  %608 = vmatprep.subr.mxu0 %v394_v0  ;;  %769 = vmatprep.subr.mxu1 %v396_v1  ;;  %v395_v3 = vld [vmem:[%s2075_s6 + $0x2e0] sm:$0xff]  ;;  %v388_v4 = vld [vmem:[%s2075_s6 + $0x2a8] sm:$0xff]  ;;  %s1822_s9 = smul.u32 (%p3655_p10), 24, %s2008_s16 }
  0x37   : > { %v390_v5 = vld [vmem:[%s2075_s6 + $0x2b8] sm:$0xff]  ;;  %609 = vmatpush1.xpose.msra.mxu0 %v393_v2  ;;  %770 = vmatpush1.xpose.msra.mxu1 %v395_v3  ;;  %v387_v6 = vld [vmem:[%s2075_s6 + $0x2a0] sm:$0xff]  ;;  %v389_v7 = vld [vmem:[%s2075_s6 + $0x2b0] sm:$0xff]  ;;  %p202_p9 = scmp.lt.s32.totalorder %s201_s26, 5 }
  0x38   : > { %610 = vmatprep.subr.mxu0 %v388_v4  ;;  %771 = vmatprep.subr.mxu1 %v390_v5  ;;  %v382_v8 = vld [vmem:[%s2075_s6 + $0x278] sm:$0xff]  ;;  %v384_v9 = vld [vmem:[%s2075_s6 + $0x288] sm:$0xff]  ;;  %v381_v10 = vld [vmem:[%s2075_s6 + $0x270] sm:$0xff]  ;;  %s3455_s11 = scalar_lea.vmem (%p3655_p10), %s3563_s3, %s1822_s9 }
  0x39   : > { %v383_v11 = vld [vmem:[%s2075_s6 + $0x280] sm:$0xff]  ;;  %v376_v12 = vld [vmem:[%s2075_s6 + $0x248] sm:$0xff]  ;;  %v378_v13 = vld [vmem:[%s2075_s6 + $0x258] sm:$0xff]  ;;  %s3661_s26 = smov (!%p202_p9, %s201_s26), 5 }
  0x3a   : > { %v375_v14 = vld [vmem:[%s2075_s6 + $0x240] sm:$0xff]  ;;  %v377_v15 = vld [vmem:[%s2075_s6 + $0x250] sm:$0xff]  ;;  %v370_v16 = vld [vmem:[%s2075_s6 + $0x218] sm:$0xff]  ;;  %s204_s15 = scalar_lea.vmem %s3562_s2, %s3661_s26 }
  0x3b   : > { %611 = vmatpush1.xpose.msra.mxu0 %v387_v6  ;;  %772 = vmatpush1.xpose.msra.mxu1 %v389_v7  ;;  %v372_v17 = vld [vmem:[%s2075_s6 + $0x228] sm:$0xff]  ;;  %v369_v18 = vld [vmem:[%s2075_s6 + $0x210] sm:$0xff]  ;;  %v371_v19 = vld [vmem:[%s2075_s6 + $0x220] sm:$0xff] }
  0x3c   : > { %612 = vmatprep.subr.mxu0 %v382_v8  ;;  %773 = vmatprep.subr.mxu1 %v384_v9  ;;  %v364_v20 = vld [vmem:[%s2075_s6 + $0x1e8] sm:$0xff]  ;;  %v366_v21 = vld [vmem:[%s2075_s6 + $0x1f8] sm:$0xff]  ;;  %v363_v22 = vld [vmem:[%s2075_s6 + $0x1e0] sm:$0xff] }
  0x3d   : > { %v365_v23 = vld [vmem:[%s2075_s6 + $0x1f0] sm:$0xff]  ;;  %v358_v24 = vld [vmem:[%s2075_s6 + $0x1b8] sm:$0xff]  ;;  %v360_v25 = vld [vmem:[%s2075_s6 + $0x1c8] sm:$0xff] }
  0x3e   : > { %v357_v26 = vld [vmem:[%s2075_s6 + $0x1b0] sm:$0xff]  ;;  %v359_v27 = vld [vmem:[%s2075_s6 + $0x1c0] sm:$0xff]  ;;  %v352_v28 = vld [vmem:[%s2075_s6 + $0x188] sm:$0xff] }
  0x3f   : > { %613 = vmatpush1.xpose.msra.mxu0 %v381_v10  ;;  %774 = vmatpush1.xpose.msra.mxu1 %v383_v11  ;;  %v354_v29 = vld [vmem:[%s2075_s6 + $0x198] sm:$0xff]  ;;  %v351_v30 = vld [vmem:[%s2075_s6 + $0x180] sm:$0xff]  ;;  %v353_v31 = vld [vmem:[%s2075_s6 + $0x190] sm:$0xff] }
  0x40   : > { %614 = vmatprep.subr.mxu0 %v376_v12  ;;  %775 = vmatprep.subr.mxu1 %v378_v13  ;;  %v346_v32 = vld [vmem:[%s2075_s6 + $0x158] sm:$0xff]  ;;  %v348_v33 = vld [vmem:[%s2075_s6 + $0x168] sm:$0xff]  ;;  %v345_v34 = vld [vmem:[%s2075_s6 + $0x150] sm:$0xff] }
  0x41   : > { %v347_v35 = vld [vmem:[%s2075_s6 + $0x160] sm:$0xff]  ;;  %v340_v36 = vld [vmem:[%s2075_s6 + $0x128] sm:$0xff]  ;;  %v342_v37 = vld [vmem:[%s2075_s6 + $0x138] sm:$0xff] }
  0x42   : > { %v339_v38 = vld [vmem:[%s2075_s6 + $0x120] sm:$0xff]  ;;  %v341_v39 = vld [vmem:[%s2075_s6 + $0x130] sm:$0xff]  ;;  %v334_v40 = vld [vmem:[%s2075_s6 + $0xf8] sm:$0xff] }
  0x43   : > { %615 = vmatpush1.xpose.msra.mxu0 %v375_v14  ;;  %776 = vmatpush1.xpose.msra.mxu1 %v377_v15  ;;  %v336_v41 = vld [vmem:[%s2075_s6 + $0x108] sm:$0xff]  ;;  %v333_v42 = vld [vmem:[%s2075_s6 + $0xf0] sm:$0xff]  ;;  %v335_v43 = vld [vmem:[%s2075_s6 + $0x100] sm:$0xff] }
  0x44   : > { %616 = vmatprep.subr.mxu0 %v370_v16  ;;  %777 = vmatprep.subr.mxu1 %v372_v17  ;;  %v328_v44 = vld [vmem:[%s2075_s6 + $0xc8] sm:$0xff]  ;;  %v330_v45 = vld [vmem:[%s2075_s6 + $0xd8] sm:$0xff]  ;;  %v327_v47 = vld [vmem:[%s2075_s6 + $0xc0] sm:$0xff] }
  0x45   : > { %v2130_v46 = vld [vmem:[%s3560_s0 + $0x8] sm:$0xff]  ;;  %v329_v48 = vld [vmem:[%s2075_s6 + $0xd0] sm:$0xff]  ;;  %v210_v49 = vld [vmem:[%s3560_s0 + $0x18] sm:$0xff] }
  0x46   : > { %v322_v50 = vld [vmem:[%s2075_s6 + $0x98] sm:$0xff]  ;;  %v324_v51 = vld [vmem:[%s2075_s6 + $0xa8] sm:$0xff]  ;;  %672 = vmatprep.mubr.f32.mxu0 %v2130_v46  ;;  %833 = vmatprep.mubr.f32.mxu1 %v210_v49  ;;  %v321_v52 = vld [vmem:[%s2075_s6 + $0x90] sm:$0xff] }
  0x47   : > { %617 = vmatpush1.xpose.msra.mxu0 %v369_v18  ;;  %778 = vmatpush1.xpose.msra.mxu1 %v371_v19  ;;  %v323_v53 = vld [vmem:[%s2075_s6 + $0xa0] sm:$0xff]  ;;  %v316_v54 = vld [vmem:[%s2075_s6 + $0x68] sm:$0xff]  ;;  %v318_v55 = vld [vmem:[%s2075_s6 + $0x78] sm:$0xff] }
  0x48   : > { %618 = vmatprep.subr.mxu0 %v364_v20  ;;  %779 = vmatprep.subr.mxu1 %v366_v21  ;;  %v315_v56 = vld [vmem:[%s2075_s6 + $0x60] sm:$0xff]  ;;  %v317_v57 = vld [vmem:[%s2075_s6 + $0x70] sm:$0xff]  ;;  %v310_v58 = vld [vmem:[%s2075_s6 + $0x38] sm:$0xff] }
  0x49   : > { %v312_v59 = vld [vmem:[%s2075_s6 + $0x48] sm:$0xff]  ;;  %v309_v60 = vld [vmem:[%s2075_s6 + $0x30] sm:$0xff]  ;;  %v311_v61 = vld [vmem:[%s2075_s6 + $0x40] sm:$0xff] }
  0x4a   : > { %v304_v62 = vld [vmem:[%s2075_s6 + $0x8] sm:$0xff]  ;;  %v306_v63 = vld [vmem:[%s2075_s6 + $0x18] sm:$0xff]  ;;  %v303_v0 = vld [vmem:[%s2075_s6] sm:$0xff] }
  0x4b   : > { %619 = vmatpush1.xpose.msra.mxu0 %v363_v22  ;;  %780 = vmatpush1.xpose.msra.mxu1 %v365_v23  ;;  %v305_v1 = vld [vmem:[%s2075_s6 + $0x10] sm:$0xff]  ;;  %v490_v2 = vld [vmem:[%s2075_s6 + $0x5d8] sm:$0xff]  ;;  %v492_v3 = vld [vmem:[%s2075_s6 + $0x5e8] sm:$0xff] }
  0x4c   : > { %620 = vmatprep.subr.mxu0 %v358_v24  ;;  %781 = vmatprep.subr.mxu1 %v360_v25  ;;  %v489_v4 = vld [vmem:[%s2075_s6 + $0x5d0] sm:$0xff]  ;;  %v491_v5 = vld [vmem:[%s2075_s6 + $0x5e0] sm:$0xff]  ;;  %v484_v6 = vld [vmem:[%s2075_s6 + $0x5a8] sm:$0xff] }
  0x4d   : > { %v486_v7 = vld [vmem:[%s2075_s6 + $0x5b8] sm:$0xff]  ;;  %v483_v8 = vld [vmem:[%s2075_s6 + $0x5a0] sm:$0xff]  ;;  %v485_v9 = vld [vmem:[%s2075_s6 + $0x5b0] sm:$0xff] }
  0x4e   : > { %v478_v10 = vld [vmem:[%s2075_s6 + $0x578] sm:$0xff]  ;;  %v480_v11 = vld [vmem:[%s2075_s6 + $0x588] sm:$0xff]  ;;  %v477_v12 = vld [vmem:[%s2075_s6 + $0x570] sm:$0xff] }
  0x4f   : > { %621 = vmatpush1.xpose.msra.mxu0 %v357_v26  ;;  %782 = vmatpush1.xpose.msra.mxu1 %v359_v27  ;;  %v479_v13 = vld [vmem:[%s2075_s6 + $0x580] sm:$0xff]  ;;  %v472_v14 = vld [vmem:[%s2075_s6 + $0x548] sm:$0xff]  ;;  %v474_v15 = vld [vmem:[%s2075_s6 + $0x558] sm:$0xff] }
  0x50   : > { %622 = vmatprep.subr.mxu0 %v352_v28  ;;  %783 = vmatprep.subr.mxu1 %v354_v29  ;;  %v471_v16 = vld [vmem:[%s2075_s6 + $0x540] sm:$0xff]  ;;  %v473_v17 = vld [vmem:[%s2075_s6 + $0x550] sm:$0xff]  ;;  %v466_v18 = vld [vmem:[%s2075_s6 + $0x518] sm:$0xff] }
  0x51   : > { %v468_v19 = vld [vmem:[%s2075_s6 + $0x528] sm:$0xff]  ;;  %v465_v20 = vld [vmem:[%s2075_s6 + $0x510] sm:$0xff]  ;;  %v467_v21 = vld [vmem:[%s2075_s6 + $0x520] sm:$0xff] }
  0x52   : > { %v460_v22 = vld [vmem:[%s2075_s6 + $0x4e8] sm:$0xff]  ;;  %v462_v23 = vld [vmem:[%s2075_s6 + $0x4f8] sm:$0xff]  ;;  %v459_v24 = vld [vmem:[%s2075_s6 + $0x4e0] sm:$0xff] }
  0x53   : > { %623 = vmatpush1.xpose.msra.mxu0 %v351_v30  ;;  %784 = vmatpush1.xpose.msra.mxu1 %v353_v31  ;;  %v461_v25 = vld [vmem:[%s2075_s6 + $0x4f0] sm:$0xff]  ;;  %v454_v26 = vld [vmem:[%s2075_s6 + $0x4b8] sm:$0xff]  ;;  %v456_v27 = vld [vmem:[%s2075_s6 + $0x4c8] sm:$0xff] }
  0x54   : > { %624 = vmatprep.subr.mxu0 %v346_v32  ;;  %785 = vmatprep.subr.mxu1 %v348_v33  ;;  %v453_v28 = vld [vmem:[%s2075_s6 + $0x4b0] sm:$0xff]  ;;  %v455_v29 = vld [vmem:[%s2075_s6 + $0x4c0] sm:$0xff]  ;;  %v448_v30 = vld [vmem:[%s2075_s6 + $0x488] sm:$0xff] }
  0x55   : > { %v450_v31 = vld [vmem:[%s2075_s6 + $0x498] sm:$0xff]  ;;  %v447_v32 = vld [vmem:[%s2075_s6 + $0x480] sm:$0xff]  ;;  %v449_v33 = vld [vmem:[%s2075_s6 + $0x490] sm:$0xff] }
  0x56   : > { %v423_v49 = vld [vmem:[%s2075_s6 + $0x3c0] sm:$0xff] }
  0x57   : > { %625 = vmatpush1.xpose.msra.mxu0 %v345_v34  ;;  %786 = vmatpush1.xpose.msra.mxu1 %v347_v35  ;;  %v442_v34 = vld [vmem:[%s2075_s6 + $0x458] sm:$0xff]  ;;  %v444_v35 = vld [vmem:[%s2075_s6 + $0x468] sm:$0xff] }
  0x58   : > { %626 = vmatprep.subr.mxu0 %v340_v36  ;;  %787 = vmatprep.subr.mxu1 %v342_v37  ;;  %v441_v36 = vld [vmem:[%s2075_s6 + $0x450] sm:$0xff]  ;;  %v443_v37 = vld [vmem:[%s2075_s6 + $0x460] sm:$0xff] }
  0x5b   : > { %627 = vmatpush1.xpose.msra.mxu0 %v339_v38  ;;  %788 = vmatpush1.xpose.msra.mxu1 %v341_v39  ;;  %v436_v38 = vld [vmem:[%s2075_s6 + $0x428] sm:$0xff]  ;;  %v438_v39 = vld [vmem:[%s2075_s6 + $0x438] sm:$0xff] }
  0x5c   : > { %628 = vmatprep.subr.mxu0 %v334_v40  ;;  %789 = vmatprep.subr.mxu1 %v336_v41  ;;  %v435_v40 = vld [vmem:[%s2075_s6 + $0x420] sm:$0xff]  ;;  %v437_v41 = vld [vmem:[%s2075_s6 + $0x430] sm:$0xff] }
  0x5f   : > { %629 = vmatpush1.xpose.msra.mxu0 %v333_v42  ;;  %790 = vmatpush1.xpose.msra.mxu1 %v335_v43  ;;  %v430_v42 = vld [vmem:[%s2075_s6 + $0x3f8] sm:$0xff]  ;;  %v432_v43 = vld [vmem:[%s2075_s6 + $0x408] sm:$0xff] }
  0x60   : > { %630 = vmatprep.subr.mxu0 %v328_v44  ;;  %791 = vmatprep.subr.mxu1 %v330_v45  ;;  %v429_v44 = vld [vmem:[%s2075_s6 + $0x3f0] sm:$0xff]  ;;  %v431_v45 = vld [vmem:[%s2075_s6 + $0x400] sm:$0xff] }
  0x63   : > { %631 = vmatpush1.xpose.msra.mxu0 %v327_v47  ;;  %792 = vmatpush1.xpose.msra.mxu1 %v329_v48  ;;  %v424_v47 = vld [vmem:[%s2075_s6 + $0x3c8] sm:$0xff]  ;;  %v426_v48 = vld [vmem:[%s2075_s6 + $0x3d8] sm:$0xff] }
  0x64   : > { %632 = vmatprep.subr.mxu0 %v322_v50  ;;  %793 = vmatprep.subr.mxu1 %v324_v51  ;;  %v425_v50 = vld [vmem:[%s2075_s6 + $0x3d0] sm:$0xff]  ;;  %v418_v51 = vld [vmem:[%s2075_s6 + $0x398] sm:$0xff] }
  0x67   : > { %633 = vmatpush1.xpose.msra.mxu0 %v321_v52  ;;  %794 = vmatpush1.xpose.msra.mxu1 %v323_v53  ;;  %v420_v52 = vld [vmem:[%s2075_s6 + $0x3a8] sm:$0xff]  ;;  %v417_v53 = vld [vmem:[%s2075_s6 + $0x390] sm:$0xff] }
  0x68   : > { %634 = vmatprep.subr.mxu0 %v316_v54  ;;  %795 = vmatprep.subr.mxu1 %v318_v55  ;;  %v419_v54 = vld [vmem:[%s2075_s6 + $0x3a0] sm:$0xff]  ;;  %v412_v55 = vld [vmem:[%s2075_s6 + $0x368] sm:$0xff] }
  0x6b   : > { %635 = vmatpush1.xpose.msra.mxu0 %v315_v56  ;;  %796 = vmatpush1.xpose.msra.mxu1 %v317_v57  ;;  %v414_v56 = vld [vmem:[%s2075_s6 + $0x378] sm:$0xff]  ;;  %v411_v57 = vld [vmem:[%s2075_s6 + $0x360] sm:$0xff] }
  0x6c   : > { %636 = vmatprep.subr.mxu0 %v310_v58  ;;  %797 = vmatprep.subr.mxu1 %v312_v59  ;;  %v413_v58 = vld [vmem:[%s2075_s6 + $0x370] sm:$0xff]  ;;  %v406_v59 = vld [vmem:[%s2075_s6 + $0x338] sm:$0xff] }
  0x6f   : > { %637 = vmatpush1.xpose.msra.mxu0 %v309_v60  ;;  %798 = vmatpush1.xpose.msra.mxu1 %v311_v61  ;;  %v408_v60 = vld [vmem:[%s2075_s6 + $0x348] sm:$0xff]  ;;  %v405_v61 = vld [vmem:[%s2075_s6 + $0x330] sm:$0xff] }
  0x70   : > { %638 = vmatprep.subr.mxu0 %v304_v62  ;;  %799 = vmatprep.subr.mxu1 %v306_v63  ;;  %v407_v62 = vld [vmem:[%s2075_s6 + $0x340] sm:$0xff]  ;;  %v400_v63 = vld [vmem:[%s2075_s6 + $0x308] sm:$0xff] }
  0x73   : > { %639 = vmatpush1.xpose.msra.mxu0 %v303_v0  ;;  %800 = vmatpush1.xpose.msra.mxu1 %v305_v1  ;;  %v402_v0 = vld [vmem:[%s2075_s6 + $0x318] sm:$0xff]  ;;  %v399_v1 = vld [vmem:[%s2075_s6 + $0x300] sm:$0xff] }
  0x74   : > { %640 = vmatprep.subr.mxu0 %v490_v2  ;;  %801 = vmatprep.subr.mxu1 %v492_v3  ;;  %v401_v2 = vld [vmem:[%s2075_s6 + $0x310] sm:$0xff]  ;;  %v398_v3 = vld [vmem:[%s2075_s6 + $0x2f8] sm:$0xff] }
  0x77   : > { %641 = vmatpush2.xpose.msra.mxu0 %v489_v4  ;;  %802 = vmatpush2.xpose.msra.mxu1 %v491_v5  ;;  %v586_v4 = vld [vmem:[%s2075_s6 + $0x8d8] sm:$0xff]  ;;  %v2223_v5 = vld [vmem:[%s3560_s0] sm:$0xff] }
  0x78   : > { %642 = vmatprep.subr.mxu0 %v484_v6  ;;  %803 = vmatprep.subr.mxu1 %v486_v7  ;;  %v2228_v6 = vld [vmem:[%s3560_s0 + $0x10] sm:$0xff] }
  0x79   : > { %v397_v7 = vld [vmem:[%s2075_s6 + $0x2f0] sm:$0xff] }
  0x7b   : > { %643 = vmatpush2.xpose.msra.mxu0 %v483_v8  ;;  %804 = vmatpush2.xpose.msra.mxu1 %v485_v9  ;;  %v585_v8 = vld [vmem:[%s2075_s6 + $0x8d0] sm:$0xff]  ;;  %v2235_v9 = vld [vmem:[%s3560_s0 + $0x38] sm:$0xff] }
  0x7c   : > { %644 = vmatprep.subr.mxu0 %v478_v10  ;;  %805 = vmatprep.subr.mxu1 %v480_v11  ;;  %v2240_v10 = vld [vmem:[%s3560_s0 + $0x48] sm:$0xff] }
  0x7d   : > { %v392_v11 = vld [vmem:[%s2075_s6 + $0x2c8] sm:$0xff] }
  0x7f   : > { %645 = vmatpush2.xpose.msra.mxu0 %v477_v12  ;;  %806 = vmatpush2.xpose.msra.mxu1 %v479_v13  ;;  %v580_v12 = vld [vmem:[%s2075_s6 + $0x8a8] sm:$0xff]  ;;  %v2249_v13 = vld [vmem:[%s3560_s0 + $0x30] sm:$0xff] }
  0x80   : > { %646 = vmatprep.subr.mxu0 %v472_v14  ;;  %807 = vmatprep.subr.mxu1 %v474_v15  ;;  %v2254_v14 = vld [vmem:[%s3560_s0 + $0x40] sm:$0xff] }
  0x81   : > { %v391_v15 = vld [vmem:[%s2075_s6 + $0x2c0] sm:$0xff] }
  0x83   : > { %647 = vmatpush2.xpose.msra.mxu0 %v471_v16  ;;  %808 = vmatpush2.xpose.msra.mxu1 %v473_v17  ;;  %v579_v16 = vld [vmem:[%s2075_s6 + $0x8a0] sm:$0xff]  ;;  %v2263_v17 = vld [vmem:[%s3560_s0 + $0x68] sm:$0xff] }
  0x84   : > { %648 = vmatprep.subr.mxu0 %v466_v18  ;;  %809 = vmatprep.subr.mxu1 %v468_v19  ;;  %v2268_v18 = vld [vmem:[%s3560_s0 + $0x78] sm:$0xff] }
  0x85   : > { %v386_v19 = vld [vmem:[%s2075_s6 + $0x298] sm:$0xff] }
  0x87   : > { %649 = vmatpush2.xpose.msra.mxu0 %v465_v20  ;;  %810 = vmatpush2.xpose.msra.mxu1 %v467_v21  ;;  %v574_v20 = vld [vmem:[%s2075_s6 + $0x878] sm:$0xff]  ;;  %v2277_v21 = vld [vmem:[%s3560_s0 + $0x60] sm:$0xff] }
  0x88   : > { %650 = vmatprep.subr.mxu0 %v460_v22  ;;  %811 = vmatprep.subr.mxu1 %v462_v23  ;;  %v2282_v22 = vld [vmem:[%s3560_s0 + $0x70] sm:$0xff] }
  0x89   : > { %v385_v23 = vld [vmem:[%s2075_s6 + $0x290] sm:$0xff] }
  0x8b   : > { %651 = vmatpush2.xpose.msra.mxu0 %v459_v24  ;;  %812 = vmatpush2.xpose.msra.mxu1 %v461_v25  ;;  %v573_v24 = vld [vmem:[%s2075_s6 + $0x870] sm:$0xff]  ;;  %v2291_v25 = vld [vmem:[%s3560_s0 + $0x98] sm:$0xff] }
  0x8c   : > { %652 = vmatprep.subr.mxu0 %v454_v26  ;;  %813 = vmatprep.subr.mxu1 %v456_v27  ;;  %v2296_v26 = vld [vmem:[%s3560_s0 + $0xa8] sm:$0xff] }
  0x8d   : > { %v380_v27 = vld [vmem:[%s2075_s6 + $0x268] sm:$0xff] }
  0x8f   : > { %653 = vmatpush2.xpose.msra.mxu0 %v453_v28  ;;  %814 = vmatpush2.xpose.msra.mxu1 %v455_v29  ;;  %v568_v28 = vld [vmem:[%s2075_s6 + $0x848] sm:$0xff]  ;;  %v2305_v29 = vld [vmem:[%s3560_s0 + $0x90] sm:$0xff] }
  0x90   : > { %654 = vmatprep.subr.mxu0 %v448_v30  ;;  %815 = vmatprep.subr.mxu1 %v450_v31  ;;  %v2310_v30 = vld [vmem:[%s3560_s0 + $0xa0] sm:$0xff] }
  0x91   : > { %v379_v31 = vld [vmem:[%s2075_s6 + $0x260] sm:$0xff] }
  0x93   : > { %655 = vmatpush2.xpose.msra.mxu0 %v447_v32  ;;  %816 = vmatpush2.xpose.msra.mxu1 %v449_v33  ;;  %v567_v32 = vld [vmem:[%s2075_s6 + $0x840] sm:$0xff]  ;;  %v2319_v33 = vld [vmem:[%s3560_s0 + $0xc8] sm:$0xff] }
  0x94   : > { %656 = vmatprep.subr.mxu0 %v442_v34  ;;  %817 = vmatprep.subr.mxu1 %v444_v35  ;;  %v2324_v34 = vld [vmem:[%s3560_s0 + $0xd8] sm:$0xff] }
  0x95   : > { %v374_v35 = vld [vmem:[%s2075_s6 + $0x238] sm:$0xff] }
  0x97   : > { %657 = vmatpush2.xpose.msra.mxu0 %v441_v36  ;;  %818 = vmatpush2.xpose.msra.mxu1 %v443_v37  ;;  %v562_v36 = vld [vmem:[%s2075_s6 + $0x818] sm:$0xff]  ;;  %v2333_v37 = vld [vmem:[%s3560_s0 + $0xc0] sm:$0xff] }
  0x98   : > { %658 = vmatprep.subr.mxu0 %v436_v38  ;;  %819 = vmatprep.subr.mxu1 %v438_v39  ;;  %v2338_v38 = vld [vmem:[%s3560_s0 + $0xd0] sm:$0xff] }
  0x99   : > { %v373_v39 = vld [vmem:[%s2075_s6 + $0x230] sm:$0xff] }
  0x9b   : > { %659 = vmatpush2.xpose.msra.mxu0 %v435_v40  ;;  %820 = vmatpush2.xpose.msra.mxu1 %v437_v41  ;;  %v561_v40 = vld [vmem:[%s2075_s6 + $0x810] sm:$0xff]  ;;  %v2347_v41 = vld [vmem:[%s3560_s0 + $0xf8] sm:$0xff] }
  0x9c   : > { %660 = vmatprep.subr.mxu0 %v430_v42  ;;  %821 = vmatprep.subr.mxu1 %v432_v43  ;;  %v2352_v42 = vld [vmem:[%s3560_s0 + $0x108] sm:$0xff] }
  0x9d   : > { %v368_v43 = vld [vmem:[%s2075_s6 + $0x208] sm:$0xff] }
  0x9f   : > { %661 = vmatpush2.xpose.msra.mxu0 %v429_v44  ;;  %822 = vmatpush2.xpose.msra.mxu1 %v431_v45  ;;  %v556_v44 = vld [vmem:[%s2075_s6 + $0x7e8] sm:$0xff]  ;;  %v2361_v45 = vld [vmem:[%s3560_s0 + $0xf0] sm:$0xff] }
  0xa0   : > { %662 = vmatprep.subr.mxu0 %v424_v47  ;;  %823 = vmatprep.subr.mxu1 %v426_v48  ;;  %v2366_v47 = vld [vmem:[%s3560_s0 + $0x100] sm:$0xff] }
  0xa1   : > { %v367_v48 = vld [vmem:[%s2075_s6 + $0x200] sm:$0xff] }
  0xa3   : > { %663 = vmatpush2.xpose.msra.mxu0 %v423_v49  ;;  %824 = vmatpush2.xpose.msra.mxu1 %v425_v50  ;;  %v555_v49 = vld [vmem:[%s2075_s6 + $0x7e0] sm:$0xff]  ;;  %v2375_v50 = vld [vmem:[%s3560_s0 + $0x128] sm:$0xff] }
  0xa4   : > { %664 = vmatprep.subr.mxu0 %v418_v51  ;;  %825 = vmatprep.subr.mxu1 %v420_v52  ;;  %v2380_v51 = vld [vmem:[%s3560_s0 + $0x138] sm:$0xff] }
  0xa5   : > { %v362_v52 = vld [vmem:[%s2075_s6 + $0x1d8] sm:$0xff] }
  0xa7   : > { %665 = vmatpush2.xpose.msra.mxu0 %v417_v53  ;;  %826 = vmatpush2.xpose.msra.mxu1 %v419_v54  ;;  %v550_v53 = vld [vmem:[%s2075_s6 + $0x7b8] sm:$0xff]  ;;  %v2389_v54 = vld [vmem:[%s3560_s0 + $0x120] sm:$0xff] }
  0xa8   : > { %666 = vmatprep.subr.mxu0 %v412_v55  ;;  %827 = vmatprep.subr.mxu1 %v414_v56  ;;  %v2394_v55 = vld [vmem:[%s3560_s0 + $0x130] sm:$0xff] }
  0xa9   : > { %v361_v56 = vld [vmem:[%s2075_s6 + $0x1d0] sm:$0xff] }
  0xab   : > { %667 = vmatpush2.xpose.msra.mxu0 %v411_v57  ;;  %828 = vmatpush2.xpose.msra.mxu1 %v413_v58  ;;  %v549_v57 = vld [vmem:[%s2075_s6 + $0x7b0] sm:$0xff]  ;;  %v2403_v58 = vld [vmem:[%s3560_s0 + $0x158] sm:$0xff] }
  0xac   : > { %668 = vmatprep.subr.mxu0 %v406_v59  ;;  %829 = vmatprep.subr.mxu1 %v408_v60  ;;  %v2408_v59 = vld [vmem:[%s3560_s0 + $0x168] sm:$0xff] }
  0xad   : > { %v356_v60 = vld [vmem:[%s2075_s6 + $0x1a8] sm:$0xff] }
  0xaf   : > { %669 = vmatpush2.xpose.msra.mxu0 %v405_v61  ;;  %830 = vmatpush2.xpose.msra.mxu1 %v407_v62  ;;  %v544_v61 = vld [vmem:[%s2075_s6 + $0x788] sm:$0xff]  ;;  %v2417_v62 = vld [vmem:[%s3560_s0 + $0x150] sm:$0xff] }
  0xb0   : > { %670 = vmatprep.subr.mxu0 %v400_v63  ;;  %831 = vmatprep.subr.mxu1 %v402_v0  ;;  %v2422_v63 = vld [vmem:[%s3560_s0 + $0x160] sm:$0xff] }
  0xb1   : > { %v355_v0 = vld [vmem:[%s2075_s6 + $0x1a0] sm:$0xff] }
  0xb3   : > { %671 = vmatpush2.xpose.msra.mxu0 %v399_v1  ;;  %832 = vmatpush2.xpose.msra.mxu1 %v401_v2  ;;  %v543_v1 = vld [vmem:[%s2075_s6 + $0x780] sm:$0xff]  ;;  %v2431_v2 = vld [vmem:[%s3560_s0 + $0x188] sm:$0xff] }
  0xb4   : > { %930 = vmatprep.subr.mxu0 %v398_v3  ;;  %1091 = vmatprep.subr.mxu1 %v586_v4  ;;  %v2436_v3 = vld [vmem:[%s3560_s0 + $0x198] sm:$0xff] }
  0xb5   : > { %v350_v4 = vld [vmem:[%s2075_s6 + $0x178] sm:$0xff] }
  0xb6   : > { %673 = vmatmul.mubr.f32.vlgmr.msra.gmra.mxu0 %v2223_v5  ;;  %834 = vmatmul.mubr.f32.vlgmr.msra.gmra.mxu1 %v2228_v6 }
  0xb7   : > { %931 = vmatpush1.xpose.msra.mxu0 %v397_v7  ;;  %1092 = vmatpush1.xpose.msra.mxu1 %v585_v8  ;;  %v538_v7 = vld [vmem:[%s2075_s6 + $0x758] sm:$0xff]  ;;  %v2445_v8 = vld [vmem:[%s3560_s0 + $0x180] sm:$0xff] }
  0xb8   : > { %678 = vmatprep.mubr.f32.mxu0 %v2235_v9  ;;  %839 = vmatprep.mubr.f32.mxu1 %v2240_v10 }
  0xb9   : > { %932 = vmatprep.subr.mxu0 %v392_v11  ;;  %1093 = vmatprep.subr.mxu1 %v580_v12  ;;  %v2450_v11 = vld [vmem:[%s3560_s0 + $0x190] sm:$0xff] }
  0xba   : > { %679 = vmatmul.mubr.f32.gmra.mxu0 %v2249_v13  ;;  %840 = vmatmul.mubr.f32.gmra.mxu1 %v2254_v14  ;;  %v349_v12 = vld [vmem:[%s2075_s6 + $0x170] sm:$0xff] }
  0xbb   : > { %933 = vmatpush1.xpose.msra.mxu0 %v391_v15  ;;  %1094 = vmatpush1.xpose.msra.mxu1 %v579_v16  ;;  %v537_v15 = vld [vmem:[%s2075_s6 + $0x750] sm:$0xff]  ;;  %v2459_v16 = vld [vmem:[%s3560_s0 + $0x1b8] sm:$0xff] }
  0xbc   : > { %684 = vmatprep.mubr.f32.mxu0 %v2263_v17  ;;  %845 = vmatprep.mubr.f32.mxu1 %v2268_v18 }
  0xbd   : > { %934 = vmatprep.subr.mxu0 %v386_v19  ;;  %1095 = vmatprep.subr.mxu1 %v574_v20  ;;  %v2464_v19 = vld [vmem:[%s3560_s0 + $0x1c8] sm:$0xff] }
  0xbe   : > { %685 = vmatmul.mubr.f32.gmra.mxu0 %v2277_v21  ;;  %846 = vmatmul.mubr.f32.gmra.mxu1 %v2282_v22  ;;  %v344_v20 = vld [vmem:[%s2075_s6 + $0x148] sm:$0xff] }
  0xbf   : > { %935 = vmatpush1.xpose.msra.mxu0 %v385_v23  ;;  %1096 = vmatpush1.xpose.msra.mxu1 %v573_v24  ;;  %v532_v23 = vld [vmem:[%s2075_s6 + $0x728] sm:$0xff]  ;;  %v2473_v24 = vld [vmem:[%s3560_s0 + $0x1b0] sm:$0xff] }
  0xc0   : > { %690 = vmatprep.mubr.f32.mxu0 %v2291_v25  ;;  %851 = vmatprep.mubr.f32.mxu1 %v2296_v26 }
  0xc1   : > { %936 = vmatprep.subr.mxu0 %v380_v27  ;;  %1097 = vmatprep.subr.mxu1 %v568_v28  ;;  %v2478_v27 = vld [vmem:[%s3560_s0 + $0x1c0] sm:$0xff] }
  0xc2   : > { %691 = vmatmul.mubr.f32.gmra.mxu0 %v2305_v29  ;;  %852 = vmatmul.mubr.f32.gmra.mxu1 %v2310_v30  ;;  %v343_v28 = vld [vmem:[%s2075_s6 + $0x140] sm:$0xff] }
  0xc3   : > { %937 = vmatpush1.xpose.msra.mxu0 %v379_v31  ;;  %1098 = vmatpush1.xpose.msra.mxu1 %v567_v32  ;;  %v531_v31 = vld [vmem:[%s2075_s6 + $0x720] sm:$0xff]  ;;  %v2487_v32 = vld [vmem:[%s3560_s0 + $0x1e8] sm:$0xff] }
  0xc4   : > { %696 = vmatprep.mubr.f32.mxu0 %v2319_v33  ;;  %857 = vmatprep.mubr.f32.mxu1 %v2324_v34 }
  0xc5   : > { %938 = vmatprep.subr.mxu0 %v374_v35  ;;  %1099 = vmatprep.subr.mxu1 %v562_v36  ;;  %v2492_v35 = vld [vmem:[%s3560_s0 + $0x1f8] sm:$0xff] }
  0xc6   : > { %697 = vmatmul.mubr.f32.gmra.mxu0 %v2333_v37  ;;  %858 = vmatmul.mubr.f32.gmra.mxu1 %v2338_v38  ;;  %v338_v36 = vld [vmem:[%s2075_s6 + $0x118] sm:$0xff] }
  0xc7   : > { %939 = vmatpush1.xpose.msra.mxu0 %v373_v39  ;;  %1100 = vmatpush1.xpose.msra.mxu1 %v561_v40  ;;  %v526_v39 = vld [vmem:[%s2075_s6 + $0x6f8] sm:$0xff]  ;;  %v2501_v40 = vld [vmem:[%s3560_s0 + $0x1e0] sm:$0xff] }
  0xc8   : > { %702 = vmatprep.mubr.f32.mxu0 %v2347_v41  ;;  %863 = vmatprep.mubr.f32.mxu1 %v2352_v42 }
  0xc9   : > { %940 = vmatprep.subr.mxu0 %v368_v43  ;;  %1101 = vmatprep.subr.mxu1 %v556_v44  ;;  %v2506_v43 = vld [vmem:[%s3560_s0 + $0x1f0] sm:$0xff] }
  0xca   : > { %703 = vmatmul.mubr.f32.gmra.mxu0 %v2361_v45  ;;  %864 = vmatmul.mubr.f32.gmra.mxu1 %v2366_v47  ;;  %v337_v44 = vld [vmem:[%s2075_s6 + $0x110] sm:$0xff] }
  0xcb   : > { %941 = vmatpush1.xpose.msra.mxu0 %v367_v48  ;;  %1102 = vmatpush1.xpose.msra.mxu1 %v555_v49  ;;  %v525_v48 = vld [vmem:[%s2075_s6 + $0x6f0] sm:$0xff]  ;;  %v2515_v49 = vld [vmem:[%s3560_s0 + $0x218] sm:$0xff] }
  0xcc   : > { %708 = vmatprep.mubr.f32.mxu0 %v2375_v50  ;;  %869 = vmatprep.mubr.f32.mxu1 %v2380_v51 }
  0xcd   : > { %942 = vmatprep.subr.mxu0 %v362_v52  ;;  %1103 = vmatprep.subr.mxu1 %v550_v53  ;;  %v2520_v52 = vld [vmem:[%s3560_s0 + $0x228] sm:$0xff] }
  0xce   : > { %709 = vmatmul.mubr.f32.gmra.mxu0 %v2389_v54  ;;  %870 = vmatmul.mubr.f32.gmra.mxu1 %v2394_v55  ;;  %v332_v53 = vld [vmem:[%s2075_s6 + $0xe8] sm:$0xff] }
  0xcf   : > { %943 = vmatpush1.xpose.msra.mxu0 %v361_v56  ;;  %1104 = vmatpush1.xpose.msra.mxu1 %v549_v57  ;;  %v520_v56 = vld [vmem:[%s2075_s6 + $0x6c8] sm:$0xff]  ;;  %v2529_v57 = vld [vmem:[%s3560_s0 + $0x210] sm:$0xff] }
  0xd0   : > { %714 = vmatprep.mubr.f32.mxu0 %v2403_v58  ;;  %875 = vmatprep.mubr.f32.mxu1 %v2408_v59 }
  0xd1   : > { %944 = vmatprep.subr.mxu0 %v356_v60  ;;  %1105 = vmatprep.subr.mxu1 %v544_v61  ;;  %v2534_v60 = vld [vmem:[%s3560_s0 + $0x220] sm:$0xff] }
  0xd2   : > { %715 = vmatmul.mubr.f32.gmra.mxu0 %v2417_v62  ;;  %876 = vmatmul.mubr.f32.gmra.mxu1 %v2422_v63  ;;  %v331_v61 = vld [vmem:[%s2075_s6 + $0xe0] sm:$0xff] }
  0xd3   : > { %945 = vmatpush1.xpose.msra.mxu0 %v355_v0  ;;  %1106 = vmatpush1.xpose.msra.mxu1 %v543_v1  ;;  %v519_v0 = vld [vmem:[%s2075_s6 + $0x6c0] sm:$0xff]  ;;  %v2543_v1 = vld [vmem:[%s3560_s0 + $0x248] sm:$0xff] }
  0xd4   : > { %720 = vmatprep.mubr.f32.mxu0 %v2431_v2  ;;  %881 = vmatprep.mubr.f32.mxu1 %v2436_v3 }
  0xd5   : > { %946 = vmatprep.subr.mxu0 %v350_v4  ;;  %1107 = vmatprep.subr.mxu1 %v538_v7  ;;  %v2548_v4 = vld [vmem:[%s3560_s0 + $0x258] sm:$0xff] }
  0xd6   : > { %721 = vmatmul.mubr.f32.gmra.mxu0 %v2445_v8  ;;  %882 = vmatmul.mubr.f32.gmra.mxu1 %v2450_v11  ;;  %3577 = vst [vmem:[#allocation6_spill] sm:$0xff] %v2548_v4  ;;  %v326_v7 = vld [vmem:[%s2075_s6 + $0xb8] sm:$0xff] }
  0xd7   : > { %947 = vmatpush1.xpose.msra.mxu0 %v349_v12  ;;  %1108 = vmatpush1.xpose.msra.mxu1 %v537_v15  ;;  %v514_v12 = vld [vmem:[%s2075_s6 + $0x698] sm:$0xff]  ;;  %v2557_v15 = vld [vmem:[%s3560_s0 + $0x240] sm:$0xff] }
  0xd8   : > { %726 = vmatprep.mubr.f32.mxu0 %v2459_v16  ;;  %887 = vmatprep.mubr.f32.mxu1 %v2464_v19 }
  0xd9   : > { %948 = vmatprep.subr.mxu0 %v344_v20  ;;  %1109 = vmatprep.subr.mxu1 %v532_v23  ;;  %v2562_v20 = vld [vmem:[%s3560_s0 + $0x250] sm:$0xff] }
  0xda   : > { %727 = vmatmul.mubr.f32.gmra.mxu0 %v2473_v24  ;;  %888 = vmatmul.mubr.f32.gmra.mxu1 %v2478_v27  ;;  %3578 = vst [vmem:[#allocation7_spill] sm:$0xff] %v2562_v20  ;;  %v325_v23 = vld [vmem:[%s2075_s6 + $0xb0] sm:$0xff] }
  0xdb   : > { %949 = vmatpush1.xpose.msra.mxu0 %v343_v28  ;;  %1110 = vmatpush1.xpose.msra.mxu1 %v531_v31  ;;  %v513_v28 = vld [vmem:[%s2075_s6 + $0x690] sm:$0xff]  ;;  %v2571_v31 = vld [vmem:[%s3560_s0 + $0x278] sm:$0xff] }
  0xdc   : > { %732 = vmatprep.mubr.f32.mxu0 %v2487_v32  ;;  %893 = vmatprep.mubr.f32.mxu1 %v2492_v35 }
  0xdd   : > { %950 = vmatprep.subr.mxu0 %v338_v36  ;;  %1111 = vmatprep.subr.mxu1 %v526_v39  ;;  %v2576_v36 = vld [vmem:[%s3560_s0 + $0x288] sm:$0xff] }
  0xde   : > { %733 = vmatmul.mubr.f32.gmra.mxu0 %v2501_v40  ;;  %894 = vmatmul.mubr.f32.gmra.mxu1 %v2506_v43  ;;  %3579 = vst [vmem:[#allocation8_spill] sm:$0xff] %v2576_v36  ;;  %v320_v39 = vld [vmem:[%s2075_s6 + $0x88] sm:$0xff] }
  0xdf   : > { %951 = vmatpush1.xpose.msra.mxu0 %v337_v44  ;;  %1112 = vmatpush1.xpose.msra.mxu1 %v525_v48  ;;  %v508_v44 = vld [vmem:[%s2075_s6 + $0x668] sm:$0xff]  ;;  %v2585_v48 = vld [vmem:[%s3560_s0 + $0x270] sm:$0xff] }
  0xe0   : > { %738 = vmatprep.mubr.f32.mxu0 %v2515_v49  ;;  %899 = vmatprep.mubr.f32.mxu1 %v2520_v52 }
  0xe1   : > { %952 = vmatprep.subr.mxu0 %v332_v53  ;;  %1113 = vmatprep.subr.mxu1 %v520_v56  ;;  %v2590_v53 = vld [vmem:[%s3560_s0 + $0x280] sm:$0xff] }
  0xe2   : > { %739 = vmatmul.mubr.f32.gmra.mxu0 %v2529_v57  ;;  %900 = vmatmul.mubr.f32.gmra.mxu1 %v2534_v60  ;;  %3580 = vst [vmem:[#allocation9_spill] sm:$0xff] %v2590_v53  ;;  %v319_v56 = vld [vmem:[%s2075_s6 + $0x80] sm:$0xff] }
  0xe3   : > { %953 = vmatpush1.xpose.msra.mxu0 %v331_v61  ;;  %1114 = vmatpush1.xpose.msra.mxu1 %v519_v0  ;;  %v507_v61 = vld [vmem:[%s2075_s6 + $0x660] sm:$0xff]  ;;  %v2599_v0 = vld [vmem:[%s3560_s0 + $0x2a8] sm:$0xff] }
  0xe4   : > { %744 = vmatprep.mubr.f32.mxu0 %v2543_v1  ;;  %905 = vmatprep.mubr.f32.mxu1 %v2548_v4  ;;  %v2659_v4 = vld [vmem:[%s3560_s0 + $0x28] sm:$0xff] }
  0xe5   : > { %954 = vmatprep.subr.mxu0 %v326_v7  ;;  %1115 = vmatprep.subr.mxu1 %v514_v12  ;;  %v2604_v7 = vld [vmem:[%s3560_s0 + $0x2b8] sm:$0xff] }
  0xe6   : > { %745 = vmatmul.mubr.f32.gmra.mxu0 %v2557_v15  ;;  %906 = vmatmul.mubr.f32.gmra.mxu1 %v2562_v20  ;;  %3581 = vst [vmem:[#allocation10_spill] sm:$0xff] %v2604_v7  ;;  %v314_v12 = vld [vmem:[%s2075_s6 + $0x58] sm:$0xff]  ;;  %v588_v20 = vld [vmem:[%s2075_s6 + $0x8e8] sm:$0xff] }
  0xe7   : > { %955 = vmatpush1.xpose.msra.mxu0 %v325_v23  ;;  %1116 = vmatpush1.xpose.msra.mxu1 %v513_v28  ;;  %v502_v23 = vld [vmem:[%s2075_s6 + $0x638] sm:$0xff]  ;;  %v2613_v28 = vld [vmem:[%s3560_s0 + $0x2a0] sm:$0xff] }
  0xe8   : > { %750 = vmatprep.mubr.f32.mxu0 %v2571_v31  ;;  %911 = vmatprep.mubr.f32.mxu1 %v2576_v36  ;;  %v496_v36 = vld [vmem:[%s2075_s6 + $0x608] sm:$0xff] }
  0xe9   : > { %956 = vmatprep.subr.mxu0 %v320_v39  ;;  %1117 = vmatprep.subr.mxu1 %v508_v44  ;;  %v2618_v39 = vld [vmem:[%s3560_s0 + $0x2b0] sm:$0xff] }
  0xea   : > { %751 = vmatmul.mubr.f32.gmra.mxu0 %v2585_v48  ;;  %912 = vmatmul.mubr.f32.gmra.mxu1 %v2590_v53  ;;  %3582 = vst [vmem:[#allocation11_spill] sm:$0xff] %v2618_v39  ;;  %v313_v44 = vld [vmem:[%s2075_s6 + $0x50] sm:$0xff] }
  0xeb   : > { %957 = vmatpush1.xpose.msra.mxu0 %v319_v56  ;;  %1118 = vmatpush1.xpose.msra.mxu1 %v507_v61  ;;  %v501_v53 = vld [vmem:[%s2075_s6 + $0x630] sm:$0xff]  ;;  %v2627_v56 = vld [vmem:[%s3560_s0 + $0x2d8] sm:$0xff]  ;;  %v2632_v61 = vld [vmem:[%s3560_s0 + $0x2e8] sm:$0xff] }
  0xec   : > { %756 = vmatprep.mubr.f32.mxu0 %v2599_v0  ;;  %917 = vmatprep.mubr.f32.mxu1 %v2604_v7  ;;  %3583 = vst [vmem:[#allocation12_spill] sm:$0xff] %v2632_v61  ;;  %v308_v7 = vld [vmem:[%s2075_s6 + $0x28] sm:$0xff] }
  0xed   : > { %958 = vmatprep.subr.mxu0 %v314_v12  ;;  %1119 = vmatprep.subr.mxu1 %v502_v23  ;;  %v2641_v12 = vld [vmem:[%s3560_s0 + $0x2d0] sm:$0xff]  ;;  %v2646_v23 = vld [vmem:[%s3560_s0 + $0x2e0] sm:$0xff] }
  0xee   : > { %757 = vmatmul.mubr.f32.gmra.mxu0 %v2613_v28  ;;  %918 = vmatmul.mubr.f32.gmra.mxu1 %v2618_v39  ;;  %3584 = vst [vmem:[#allocation13_spill] sm:$0xff] %v2646_v23  ;;  %v307_v39 = vld [vmem:[%s2075_s6 + $0x20] sm:$0xff] }
  0xef   : > { %959 = vmatpush1.xpose.msra.mxu0 %v313_v44  ;;  %1120 = vmatpush1.xpose.msra.mxu1 %v501_v53  ;;  %v495_v44 = vld [vmem:[%s2075_s6 + $0x600] sm:$0xff]  ;;  %v494_v53 = vld [vmem:[%s2075_s6 + $0x5f8] sm:$0xff] }
  0xf0   : > { %762 = vmatprep.mubr.f32.mxu0 %v2627_v56  ;;  %923 = vmatprep.mubr.f32.mxu1 %v2632_v61  ;;  %v488_v61 = vld [vmem:[%s2075_s6 + $0x5c8] sm:$0xff] }
  0xf1   : > { %960 = vmatprep.subr.mxu0 %v308_v7  ;;  %1121 = vmatprep.subr.mxu1 %v496_v36  ;;  %v493_v36 = vld [vmem:[%s2075_s6 + $0x5f0] sm:$0xff]  ;;  %v587_v7 = vld [vmem:[%s2075_s6 + $0x8e0] sm:$0xff] }
  0xf2   : > { %763 = vmatmul.mubr.f32.gmra.mxu0 %v2641_v12  ;;  %924 = vmatmul.mubr.f32.gmra.mxu1 %v2646_v23  ;;  %v582_v23 = vld [vmem:[%s2075_s6 + $0x8b8] sm:$0xff] }
  0xf3   : > { %961 = vmatpush1.xpose.msra.mxu0 %v307_v39  ;;  %1122 = vmatpush1.xpose.msra.mxu1 %v495_v44  ;;  %v581_v39 = vld [vmem:[%s2075_s6 + $0x8b0] sm:$0xff]  ;;  %v482_v44 = vld [vmem:[%s2075_s6 + $0x598] sm:$0xff] }
  0xf4   : > { %1155 = vmatprep.mubr.f32.mxu1 %v2130_v46  ;;  %962 = vmatprep.subr.mxu0 %v494_v53  ;;  %v487_v46 = vld [vmem:[%s2075_s6 + $0x5c0] sm:$0xff]  ;;  %v470_v53 = vld [vmem:[%s2075_s6 + $0x538] sm:$0xff] }
  0xf5   : > { %1236 = vmatprep.subr.mxu1 %v588_v20  ;;  %994 = vmatprep.mubr.f32.mxu0 %v2659_v4  ;;  %v576_v20 = vld [vmem:[%s2075_s6 + $0x888] sm:$0xff] }
  0xf6   : > { %1156 = vmatmul.mubr.f32.vlgmr.msra.gmra.mxu1 %v2223_v5  ;;  %v481_v5 = vld [vmem:[%s2075_s6 + $0x590] sm:$0xff] }
  0xf7   : > { %963 = vmatpush2.xpose.msra.mxu0 %v493_v36  ;;  %1237 = vmatpush1.xpose.msra.mxu1 %v587_v7  ;;  %v564_v36 = vld [vmem:[%s2075_s6 + $0x828] sm:$0xff] }
  0xf8   : > { %1160 = vmatprep.mubr.f32.mxu1 %v2235_v9  ;;  %964 = vmatprep.subr.mxu0 %v488_v61  ;;  %v575_v9 = vld [vmem:[%s2075_s6 + $0x880] sm:$0xff]  ;;  %v476_v61 = vld [vmem:[%s2075_s6 + $0x568] sm:$0xff] }
  0xf9   : > { %1238 = vmatprep.subr.mxu1 %v582_v23  ;;  %v570_v23 = vld [vmem:[%s2075_s6 + $0x858] sm:$0xff]  ;;  %v464_v7 = vld [vmem:[%s2075_s6 + $0x508] sm:$0xff] }
  0xfa   : > { %1161 = vmatmul.mubr.f32.gmra.mxu1 %v2249_v13  ;;  %v475_v13 = vld [vmem:[%s2075_s6 + $0x560] sm:$0xff] }
  0xfb   : > { %965 = vmatpush2.xpose.msra.mxu0 %v487_v46  ;;  %1239 = vmatpush1.xpose.msra.mxu1 %v581_v39  ;;  %v558_v46 = vld [vmem:[%s2075_s6 + $0x7f8] sm:$0xff] }
  0xfc   : > { %1165 = vmatprep.mubr.f32.mxu1 %v2263_v17  ;;  %966 = vmatprep.subr.mxu0 %v482_v44  ;;  %v569_v17 = vld [vmem:[%s2075_s6 + $0x850] sm:$0xff]  ;;  %v458_v39 = vld [vmem:[%s2075_s6 + $0x4d8] sm:$0xff]  ;;  %v552_v44 = vld [vmem:[%s2075_s6 + $0x7c8] sm:$0xff] }
  0xfd   : > { %1240 = vmatprep.subr.mxu1 %v576_v20  ;;  %v452_v20 = vld [vmem:[%s2075_s6 + $0x4a8] sm:$0xff] }
  0xfe   : > { %1166 = vmatmul.mubr.f32.gmra.mxu1 %v2277_v21  ;;  %v469_v21 = vld [vmem:[%s2075_s6 + $0x530] sm:$0xff] }
  0xff   : > { %967 = vmatpush2.xpose.msra.mxu0 %v481_v5  ;;  %1241 = vmatpush1.xpose.msra.mxu1 %v575_v9  ;;  %v546_v5 = vld [vmem:[%s2075_s6 + $0x798] sm:$0xff] }
 0x100   : > { %1170 = vmatprep.mubr.f32.mxu1 %v2291_v25  ;;  %968 = vmatprep.subr.mxu0 %v476_v61  ;;  %v563_v25 = vld [vmem:[%s2075_s6 + $0x820] sm:$0xff]  ;;  %v446_v9 = vld [vmem:[%s2075_s6 + $0x478] sm:$0xff]  ;;  %v540_v61 = vld [vmem:[%s2075_s6 + $0x768] sm:$0xff] }
 0x101   : > { %1242 = vmatprep.subr.mxu1 %v570_v23  ;;  %v440_v23 = vld [vmem:[%s2075_s6 + $0x448] sm:$0xff] }
 0x102   : > { %1171 = vmatmul.mubr.f32.gmra.mxu1 %v2305_v29  ;;  %v463_v29 = vld [vmem:[%s2075_s6 + $0x500] sm:$0xff] }
 0x103   : > { %969 = vmatpush2.xpose.msra.mxu0 %v475_v13  ;;  %1243 = vmatpush1.xpose.msra.mxu1 %v569_v17  ;;  %v534_v13 = vld [vmem:[%s2075_s6 + $0x738] sm:$0xff] }
 0x104   : > { %1175 = vmatprep.mubr.f32.mxu1 %v2319_v33  ;;  %970 = vmatprep.subr.mxu0 %v470_v53  ;;  %v557_v33 = vld [vmem:[%s2075_s6 + $0x7f0] sm:$0xff]  ;;  %v434_v17 = vld [vmem:[%s2075_s6 + $0x418] sm:$0xff]  ;;  %v528_v53 = vld [vmem:[%s2075_s6 + $0x708] sm:$0xff] }
 0x105   : > { %1244 = vmatprep.subr.mxu1 %v564_v36  ;;  %v428_v36 = vld [vmem:[%s2075_s6 + $0x3e8] sm:$0xff] }
 0x106   : > { %1176 = vmatmul.mubr.f32.gmra.mxu1 %v2333_v37  ;;  %v457_v37 = vld [vmem:[%s2075_s6 + $0x4d0] sm:$0xff] }
 0x107   : > { %971 = vmatpush2.xpose.msra.mxu0 %v469_v21  ;;  %1245 = vmatpush1.xpose.msra.mxu1 %v563_v25  ;;  %v522_v21 = vld [vmem:[%s2075_s6 + $0x6d8] sm:$0xff] }
 0x108   : > { %1180 = vmatprep.mubr.f32.mxu1 %v2347_v41  ;;  %972 = vmatprep.subr.mxu0 %v464_v7  ;;  %v551_v41 = vld [vmem:[%s2075_s6 + $0x7c0] sm:$0xff]  ;;  %v422_v25 = vld [vmem:[%s2075_s6 + $0x3b8] sm:$0xff]  ;;  %v516_v7 = vld [vmem:[%s2075_s6 + $0x6a8] sm:$0xff] }
 0x109   : > { %1246 = vmatprep.subr.mxu1 %v558_v46  ;;  %v416_v46 = vld [vmem:[%s2075_s6 + $0x388] sm:$0xff] }
 0x10a   : > { %1181 = vmatmul.mubr.f32.gmra.mxu1 %v2361_v45  ;;  %v451_v45 = vld [vmem:[%s2075_s6 + $0x4a0] sm:$0xff] }
 0x10b   : > { %973 = vmatpush2.xpose.msra.mxu0 %v463_v29  ;;  %1247 = vmatpush1.xpose.msra.mxu1 %v557_v33  ;;  %v510_v29 = vld [vmem:[%s2075_s6 + $0x678] sm:$0xff] }
 0x10c   : > { %1185 = vmatprep.mubr.f32.mxu1 %v2375_v50  ;;  %974 = vmatprep.subr.mxu0 %v458_v39  ;;  %v545_v50 = vld [vmem:[%s2075_s6 + $0x790] sm:$0xff]  ;;  %v410_v33 = vld [vmem:[%s2075_s6 + $0x358] sm:$0xff]  ;;  %v504_v39 = vld [vmem:[%s2075_s6 + $0x648] sm:$0xff] }
 0x10d   : > { %1248 = vmatprep.subr.mxu1 %v552_v44  ;;  %v404_v44 = vld [vmem:[%s2075_s6 + $0x328] sm:$0xff] }
 0x10e   : > { %1186 = vmatmul.mubr.f32.gmra.mxu1 %v2389_v54  ;;  %v445_v54 = vld [vmem:[%s2075_s6 + $0x470] sm:$0xff] }
 0x10f   : > { %975 = vmatpush2.xpose.msra.mxu0 %v457_v37  ;;  %1249 = vmatpush1.xpose.msra.mxu1 %v551_v41  ;;  %v593_v37 = vlaneseq  ;;  %v498_v41 = vld [vmem:[%s2075_s6 + $0x618] sm:$0xff] }
 0x110   : > { %1190 = vmatprep.mubr.f32.mxu1 %v2403_v58  ;;  %976 = vmatprep.subr.mxu0 %v452_v20  ;;  %v539_v58 = vld [vmem:[%s2075_s6 + $0x760] sm:$0xff]  ;;  %v497_v20 = vld [vmem:[%s2075_s6 + $0x610] sm:$0xff] }
 0x111   : > { %1250 = vmatprep.subr.mxu1 %v546_v5  ;;  %v2760_v5 = vshrl.u32 %v593_v37, 7  ;;  %v512_v37 = vld [vmem:[%s2075_s6 + $0x688] sm:$0xff] }
 0x112   : > { %1191 = vmatmul.mubr.f32.gmra.mxu1 %v2417_v62  ;;  %v439_v62 = vld [vmem:[%s2075_s6 + $0x440] sm:$0xff] }
 0x113   : > { %977 = vmatpush2.xpose.msra.mxu0 %v451_v45  ;;  %1251 = vmatpush1.xpose.msra.mxu1 %v545_v50  ;;  %v1901_v45 = vld [vmem:[%s3560_s0 + $0x18] sm:$0xff]  ;;  %v589_v50 = vld [vmem:[%s2075_s6 + $0x8f0] sm:$0xff] }
 0x114   : > { %1195 = vmatprep.mubr.f32.mxu1 %v2431_v2  ;;  %978 = vmatprep.subr.mxu0 %v446_v9  ;;  %v533_v2 = vld [vmem:[%s2075_s6 + $0x730] sm:$0xff]  ;;  %v2773_v9 = vld [vmem:[%s204_s15] sm:$0x7] }
 0x115   : > { %1252 = vmatprep.subr.mxu1 %v540_v61 }
 0x116   : > { %1196 = vmatmul.mubr.f32.gmra.mxu1 %v2445_v8  ;;  %v433_v8 = vld [vmem:[%s2075_s6 + $0x410] sm:$0xff] }
 0x117   : > { %979 = vmatpush2.xpose.msra.mxu0 %v445_v54  ;;  %1253 = vmatpush1.xpose.msra.mxu1 %v539_v58  ;;  %v584_v54 = vld [vmem:[%s2075_s6 + $0x8c8] sm:$0xff]  ;;  %v2789_v58 = vld [vmem:[%s3560_s0 + $0x50] sm:$0xff] }
 0x118   : > { %1200 = vmatprep.mubr.f32.mxu1 %v2459_v16  ;;  %980 = vmatprep.subr.mxu0 %v440_v23  ;;  %v527_v16 = vld [vmem:[%s2075_s6 + $0x700] sm:$0xff] }
 0x119   : > { %1254 = vmatprep.subr.mxu1 %v534_v13  ;;  %v583_v23 = vld [vmem:[%s2075_s6 + $0x8c0] sm:$0xff]  ;;  %v578_v13 = vld [vmem:[%s2075_s6 + $0x898] sm:$0xff] }
 0x11a   : > { %1201 = vmatmul.mubr.f32.gmra.mxu1 %v2473_v24  ;;  %v427_v24 = vld [vmem:[%s2075_s6 + $0x3e0] sm:$0xff] }
 0x11b   : > { %981 = vmatpush2.xpose.msra.mxu0 %v439_v62  ;;  %1255 = vmatpush1.xpose.msra.mxu1 %v533_v2  ;;  %v577_v62 = vld [vmem:[%s2075_s6 + $0x890] sm:$0xff]  ;;  %v572_v2 = vld [vmem:[%s2075_s6 + $0x868] sm:$0xff] }
 0x11c   : > { %1205 = vmatprep.mubr.f32.mxu1 %v2487_v32  ;;  %982 = vmatprep.subr.mxu0 %v434_v17  ;;  %v521_v32 = vld [vmem:[%s2075_s6 + $0x6d0] sm:$0xff]  ;;  %v571_v17 = vld [vmem:[%s2075_s6 + $0x860] sm:$0xff] }
 0x11d   : > { %1256 = vmatprep.subr.mxu1 %v528_v53  ;;  %v566_v53 = vld [vmem:[%s2075_s6 + $0x838] sm:$0xff] }
 0x11e   : > { %1206 = vmatmul.mubr.f32.gmra.mxu1 %v2501_v40  ;;  %v421_v40 = vld [vmem:[%s2075_s6 + $0x3b0] sm:$0xff] }
 0x11f   : > { %983 = vmatpush2.xpose.msra.mxu0 %v433_v8  ;;  %1257 = vmatpush1.xpose.msra.mxu1 %v527_v16  ;;  %v565_v8 = vld [vmem:[%s2075_s6 + $0x830] sm:$0xff]  ;;  %v560_v16 = vld [vmem:[%s2075_s6 + $0x808] sm:$0xff] }
 0x120   : > { %1210 = vmatprep.mubr.f32.mxu1 %v2515_v49  ;;  %984 = vmatprep.subr.mxu0 %v428_v36  ;;  %v515_v49 = vld [vmem:[%s2075_s6 + $0x6a0] sm:$0xff] }
 0x121   : > { %1258 = vmatprep.subr.mxu1 %v522_v21  ;;  %v559_v36 = vld [vmem:[%s2075_s6 + $0x800] sm:$0xff]  ;;  %v554_v21 = vld [vmem:[%s2075_s6 + $0x7d8] sm:$0xff] }
 0x122   : > { %1211 = vmatmul.mubr.f32.gmra.mxu1 %v2529_v57  ;;  %v415_v57 = vld [vmem:[%s2075_s6 + $0x380] sm:$0xff] }
 0x123   : > { %985 = vmatpush2.xpose.msra.mxu0 %v427_v24  ;;  %1259 = vmatpush1.xpose.msra.mxu1 %v521_v32  ;;  %v553_v24 = vld [vmem:[%s2075_s6 + $0x7d0] sm:$0xff]  ;;  %v548_v32 = vld [vmem:[%s2075_s6 + $0x7a8] sm:$0xff] }
 0x124   : > { %1215 = vmatprep.mubr.f32.mxu1 %v2543_v1  ;;  %986 = vmatprep.subr.mxu0 %v422_v25  ;;  %v509_v1 = vld [vmem:[%s2075_s6 + $0x670] sm:$0xff]  ;;  %v547_v25 = vld [vmem:[%s2075_s6 + $0x7a0] sm:$0xff] }
 0x125   : > { %1260 = vmatprep.subr.mxu1 %v516_v7  ;;  %v542_v7 = vld [vmem:[%s2075_s6 + $0x778] sm:$0xff] }
 0x126   : > { %1216 = vmatmul.mubr.f32.gmra.mxu1 %v2557_v15  ;;  %v409_v15 = vld [vmem:[%s2075_s6 + $0x350] sm:$0xff] }
 0x127   : > { %987 = vmatpush2.xpose.msra.mxu0 %v421_v40  ;;  %1261 = vmatpush1.xpose.msra.mxu1 %v515_v49  ;;  %v541_v40 = vld [vmem:[%s2075_s6 + $0x770] sm:$0xff]  ;;  %v536_v49 = vld [vmem:[%s2075_s6 + $0x748] sm:$0xff] }
 0x128   : > { %1220 = vmatprep.mubr.f32.mxu1 %v2571_v31  ;;  %988 = vmatprep.subr.mxu0 %v416_v46  ;;  %v503_v31 = vld [vmem:[%s2075_s6 + $0x640] sm:$0xff] }
 0x129   : > { %1262 = vmatprep.subr.mxu1 %v510_v29  ;;  %v535_v46 = vld [vmem:[%s2075_s6 + $0x740] sm:$0xff]  ;;  %v530_v29 = vld [vmem:[%s2075_s6 + $0x718] sm:$0xff] }
 0x12a   : > { %1221 = vmatmul.mubr.f32.gmra.mxu1 %v2585_v48  ;;  %v403_v48 = vld [vmem:[%s2075_s6 + $0x320] sm:$0xff] }
 0x12b   : > { %989 = vmatpush2.xpose.msra.mxu0 %v415_v57  ;;  %1263 = vmatpush1.xpose.msra.mxu1 %v509_v1  ;;  %v529_v57 = vld [vmem:[%s2075_s6 + $0x710] sm:$0xff]  ;;  %v524_v1 = vld [vmem:[%s2075_s6 + $0x6e8] sm:$0xff] }
 0x12c   : > { %1225 = vmatprep.mubr.f32.mxu1 %v2599_v0  ;;  %990 = vmatprep.subr.mxu0 %v410_v33  ;;  %v590_v0 = vld [vmem:[%s2075_s6 + $0x8f8] sm:$0xff]  ;;  %v523_v33 = vld [vmem:[%s2075_s6 + $0x6e0] sm:$0xff] }
 0x12d   : > { %1264 = vmatprep.subr.mxu1 %v504_v39  ;;  %v518_v39 = vld [vmem:[%s2075_s6 + $0x6b8] sm:$0xff] }
 0x12e   : > { %1226 = vmatmul.mubr.f32.gmra.mxu1 %v2613_v28  ;;  %v2766_v28 = vld [vmem:[%s3560_s0 + $0x20] sm:$0xff] }
 0x12f   : > { %991 = vmatpush2.xpose.msra.mxu0 %v409_v15  ;;  %1265 = vmatpush1.xpose.msra.mxu1 %v503_v31  ;;  %v3585_v15 = vld [vmem:[#allocation6_spill] sm:$0xff]  ;;  %v517_v31 = vld [vmem:[%s2075_s6 + $0x6b0] sm:$0xff] }
 0x130   : > { %1230 = vmatprep.mubr.f32.mxu1 %v2627_v56  ;;  %992 = vmatprep.subr.mxu0 %v404_v44  ;;  %v603_v56 = vsub.s32 2, %v2760_v5  ;;  %v3586_v44 = vld [vmem:[#allocation7_spill] sm:$0xff] }
 0x131   : > { %1266 = vmatprep.subr.mxu1 %v498_v41  ;;  %v2981_v41 = vld [vmem:[%s3560_s0 + $0x290] sm:$0xff] }
 0x132   : > { %1231 = vmatmul.mubr.f32.gmra.mxu1 %v2641_v12  ;;  %v2778_v12 = vld [vmem:[%s3560_s0 + $0x58] sm:$0xff]  ;;  %v2781_v61 = vrot.slane %v2773_v9, %v603_v56 }
 0x133   : > { %993 = vmatpush2.xpose.msra.mxu0 %v403_v48  ;;  %1267 = vmatpush1.xpose.msra.mxu1 %v497_v20  ;;  %v3587_v48 = vld [vmem:[#allocation8_spill] sm:$0xff]  ;;  %v511_v20 = vld [vmem:[%s2075_s6 + $0x680] sm:$0xff]  ;;  %v3588_v56 = vld [vmem:[#allocation9_spill] sm:$0xff] }
 0x134   : > { %1300 = vmatprep.mubr.f32.mxu1 %v1901_v45  ;;  %1381 = vmatprep.subr.mxu0 %v590_v0  ;;  %v506_v45 = vld [vmem:[%s2075_s6 + $0x658] sm:$0xff] }
 0x135   : > { %1823 = vmatprep.subr.mxu1 %v590_v0  ;;  %v2989_v0 = vld [vmem:[%s3560_s0 + $0x2c8] sm:$0xff] }
 0x136   : > { %995 = vmatmul.mubr.f32.vlgmr.msra.gmra.mxu0 %v2766_v28  ;;  %1301 = vmatmul.mubr.f32.vlgmr.msra.gmra.mxu1 %v2228_v6  ;;  %v2797_v6 = vld [vmem:[%s3560_s0 + $0x88] sm:$0xff] }
 0x137   : > { %1382 = vmatpush1.xpose.msra.mxu0 %v589_v50  ;;  %1839 = vmatpush1.xpose.msra.mxu1 %v589_v50  ;;  %v2997_v50 = vld [vmem:[%s3560_s0 + $0x2c0] sm:$0xff] }
 0x138   : > { %1000 = vmatprep.mubr.f32.mxu0 %v2778_v12  ;;  %1305 = vmatprep.mubr.f32.mxu1 %v2240_v10  ;;  %v2805_v10 = vld [vmem:[%s3560_s0 + $0x80] sm:$0xff] }
 0x139   : > { %1383 = vmatprep.subr.mxu0 %v584_v54  ;;  %1824 = vmatprep.subr.mxu1 %v584_v54  ;;  %v3589_v54 = vld [vmem:[#allocation10_spill] sm:$0xff] }
 0x13a   : > { %1001 = vmatmul.mubr.f32.gmra.mxu0 %v2789_v58  ;;  %1306 = vmatmul.mubr.f32.gmra.mxu1 %v2254_v14  ;;  %v2813_v14 = vld [vmem:[%s3560_s0 + $0xb8] sm:$0xff] }
 0x13b   : > { %1384 = vmatpush1.xpose.msra.mxu0 %v583_v23  ;;  %1840 = vmatpush1.xpose.msra.mxu1 %v583_v23  ;;  %v505_v23 = vld [vmem:[%s2075_s6 + $0x650] sm:$0xff] }
 0x13c   : > { %1006 = vmatprep.mubr.f32.mxu0 %v2797_v6  ;;  %1310 = vmatprep.mubr.f32.mxu1 %v2268_v18  ;;  %v2821_v18 = vld [vmem:[%s3560_s0 + $0xb0] sm:$0xff] }
 0x13d   : > { %1385 = vmatprep.subr.mxu0 %v578_v13  ;;  %1825 = vmatprep.subr.mxu1 %v578_v13  ;;  %v3005_v13 = vld [vmem:[%s3560_s0 + $0x2f8] sm:$0xff] }
 0x13e   : > { %1007 = vmatmul.mubr.f32.gmra.mxu0 %v2805_v10  ;;  %1311 = vmatmul.mubr.f32.gmra.mxu1 %v2282_v22  ;;  %v2829_v22 = vld [vmem:[%s3560_s0 + $0xe8] sm:$0xff] }
 0x13f   : > { %1386 = vmatpush1.xpose.msra.mxu0 %v577_v62  ;;  %1841 = vmatpush1.xpose.msra.mxu1 %v577_v62  ;;  %v3590_v62 = vld [vmem:[#allocation11_spill] sm:$0xff] }
 0x140   : > { %1012 = vmatprep.mubr.f32.mxu0 %v2813_v14  ;;  %1315 = vmatprep.mubr.f32.mxu1 %v2296_v26  ;;  %v2837_v26 = vld [vmem:[%s3560_s0 + $0xe0] sm:$0xff] }
 0x141   : > { %1387 = vmatprep.subr.mxu0 %v572_v2  ;;  %1826 = vmatprep.subr.mxu1 %v572_v2  ;;  %v500_v2 = vld [vmem:[%s2075_s6 + $0x628] sm:$0xff] }
 0x142   : > { %1013 = vmatmul.mubr.f32.gmra.mxu0 %v2821_v18  ;;  %1316 = vmatmul.mubr.f32.gmra.mxu1 %v2310_v30  ;;  %v2845_v30 = vld [vmem:[%s3560_s0 + $0x118] sm:$0xff] }
 0x143   : > { %1388 = vmatpush1.xpose.msra.mxu0 %v571_v17  ;;  %1842 = vmatpush1.xpose.msra.mxu1 %v571_v17  ;;  %v301_v17 = vld [vmem:[%s3560_s0 + $0x2f0] sm:$0xff] }
 0x144   : > { %1018 = vmatprep.mubr.f32.mxu0 %v2829_v22  ;;  %1320 = vmatprep.mubr.f32.mxu1 %v2324_v34  ;;  %v2853_v34 = vld [vmem:[%s3560_s0 + $0x110] sm:$0xff] }
 0x145   : > { %1389 = vmatprep.subr.mxu0 %v566_v53  ;;  %1827 = vmatprep.subr.mxu1 %v566_v53  ;;  %v3591_v53 = vld [vmem:[#allocation12_spill] sm:$0xff] }
 0x146   : > { %1019 = vmatmul.mubr.f32.gmra.mxu0 %v2837_v26  ;;  %1321 = vmatmul.mubr.f32.gmra.mxu1 %v2338_v38  ;;  %v2861_v38 = vld [vmem:[%s3560_s0 + $0x148] sm:$0xff] }
 0x147   : > { %1390 = vmatpush1.xpose.msra.mxu0 %v565_v8  ;;  %1843 = vmatpush1.xpose.msra.mxu1 %v565_v8  ;;  %v499_v8 = vld [vmem:[%s2075_s6 + $0x620] sm:$0xff]  ;;  %s1858_s6 = smul.u32 384, %s2071_s27 }
 0x148   : > { %1024 = vmatprep.mubr.f32.mxu0 %v2845_v30  ;;  %1325 = vmatprep.mubr.f32.mxu1 %v2352_v42  ;;  %v2869_v42 = vld [vmem:[%s3560_s0 + $0x140] sm:$0xff] }
 0x149   : > { %1391 = vmatprep.subr.mxu0 %v560_v16  ;;  %1828 = vmatprep.subr.mxu1 %v560_v16  ;;  %v3592_v16 = vld [vmem:[#allocation13_spill] sm:$0xff]  ;;  %s3253_s27 = scalar_lea.vmem [#allocation4], %s1858_s6 }
 0x14a   : > { %1025 = vmatmul.mubr.f32.gmra.mxu0 %v2853_v34  ;;  %1326 = vmatmul.mubr.f32.gmra.mxu1 %v2366_v47  ;;  %v2877_v47 = vld [vmem:[%s3560_s0 + $0x178] sm:$0xff] }
 0x14b   : > { %1392 = vmatpush1.xpose.msra.mxu0 %v559_v36  ;;  %1844 = vmatpush1.xpose.msra.mxu1 %v559_v36 }
 0x14c   : > { %1030 = vmatprep.mubr.f32.mxu0 %v2861_v38  ;;  %1330 = vmatprep.mubr.f32.mxu1 %v2380_v51  ;;  %v2885_v51 = vld [vmem:[%s3560_s0 + $0x170] sm:$0xff] }
 0x14d   : > { %1393 = vmatprep.subr.mxu0 %v554_v21  ;;  %1829 = vmatprep.subr.mxu1 %v554_v21 }
 0x14e   : > { %1031 = vmatmul.mubr.f32.gmra.mxu0 %v2869_v42  ;;  %1331 = vmatmul.mubr.f32.gmra.mxu1 %v2394_v55  ;;  %v2893_v55 = vld [vmem:[%s3560_s0 + $0x1a8] sm:$0xff] }
 0x14f   : > { %1394 = vmatpush1.xpose.msra.mxu0 %v553_v24  ;;  %1845 = vmatpush1.xpose.msra.mxu1 %v553_v24 }
 0x150   : > { %1036 = vmatprep.mubr.f32.mxu0 %v2877_v47  ;;  %1335 = vmatprep.mubr.f32.mxu1 %v2408_v59  ;;  %v2901_v59 = vld [vmem:[%s3560_s0 + $0x1a0] sm:$0xff] }
 0x151   : > { %1395 = vmatprep.subr.mxu0 %v548_v32  ;;  %1830 = vmatprep.subr.mxu1 %v548_v32 }
 0x152   : > { %1037 = vmatmul.mubr.f32.gmra.mxu0 %v2885_v51  ;;  %1336 = vmatmul.mubr.f32.gmra.mxu1 %v2422_v63  ;;  %v2909_v63 = vld [vmem:[%s3560_s0 + $0x1d8] sm:$0xff] }
 0x153   : > { %1396 = vmatpush1.xpose.msra.mxu0 %v547_v25  ;;  %1846 = vmatpush1.xpose.msra.mxu1 %v547_v25 }
 0x154   : > { %1042 = vmatprep.mubr.f32.mxu0 %v2893_v55  ;;  %1340 = vmatprep.mubr.f32.mxu1 %v2436_v3  ;;  %v2917_v3 = vld [vmem:[%s3560_s0 + $0x1d0] sm:$0xff] }
 0x155   : > { %1397 = vmatprep.subr.mxu0 %v542_v7  ;;  %1831 = vmatprep.subr.mxu1 %v542_v7 }
 0x156   : > { %1043 = vmatmul.mubr.f32.gmra.mxu0 %v2901_v59  ;;  %1341 = vmatmul.mubr.f32.gmra.mxu1 %v2450_v11  ;;  %v2925_v11 = vld [vmem:[%s3560_s0 + $0x208] sm:$0xff] }
 0x157   : > { %1398 = vmatpush1.xpose.msra.mxu0 %v541_v40  ;;  %1847 = vmatpush1.xpose.msra.mxu1 %v541_v40 }
 0x158   : > { %1048 = vmatprep.mubr.f32.mxu0 %v2909_v63  ;;  %1345 = vmatprep.mubr.f32.mxu1 %v2464_v19  ;;  %v2933_v19 = vld [vmem:[%s3560_s0 + $0x200] sm:$0xff] }
 0x159   : > { %1399 = vmatprep.subr.mxu0 %v536_v49  ;;  %1832 = vmatprep.subr.mxu1 %v536_v49 }
 0x15a   : > { %1049 = vmatmul.mubr.f32.gmra.mxu0 %v2917_v3  ;;  %1346 = vmatmul.mubr.f32.gmra.mxu1 %v2478_v27  ;;  %v2941_v27 = vld [vmem:[%s3560_s0 + $0x238] sm:$0xff] }
 0x15b   : > { %1400 = vmatpush1.xpose.msra.mxu0 %v535_v46  ;;  %1848 = vmatpush1.xpose.msra.mxu1 %v535_v46 }
 0x15c   : > { %1054 = vmatprep.mubr.f32.mxu0 %v2925_v11  ;;  %1350 = vmatprep.mubr.f32.mxu1 %v2492_v35  ;;  %v2949_v35 = vld [vmem:[%s3560_s0 + $0x230] sm:$0xff] }
 0x15d   : > { %1401 = vmatprep.subr.mxu0 %v530_v29  ;;  %1833 = vmatprep.subr.mxu1 %v530_v29 }
 0x15e   : > { %1055 = vmatmul.mubr.f32.gmra.mxu0 %v2933_v19  ;;  %1351 = vmatmul.mubr.f32.gmra.mxu1 %v2506_v43  ;;  %v2957_v43 = vld [vmem:[%s3560_s0 + $0x268] sm:$0xff] }
 0x15f   : > { %1402 = vmatpush1.xpose.msra.mxu0 %v529_v57  ;;  %1849 = vmatpush1.xpose.msra.mxu1 %v529_v57 }
 0x160   : > { %1060 = vmatprep.mubr.f32.mxu0 %v2941_v27  ;;  %1355 = vmatprep.mubr.f32.mxu1 %v2520_v52  ;;  %v2965_v52 = vld [vmem:[%s3560_s0 + $0x260] sm:$0xff] }
 0x161   : > { %1403 = vmatprep.subr.mxu0 %v524_v1  ;;  %1834 = vmatprep.subr.mxu1 %v524_v1 }
 0x162   : > { %1061 = vmatmul.mubr.f32.gmra.mxu0 %v2949_v35  ;;  %1356 = vmatmul.mubr.f32.gmra.mxu1 %v2534_v60  ;;  %v2973_v60 = vld [vmem:[%s3560_s0 + $0x298] sm:$0xff] }
 0x163   : > { %1404 = vmatpush1.xpose.msra.mxu0 %v523_v33  ;;  %1850 = vmatpush1.xpose.msra.mxu1 %v523_v33 }
 0x164   : > { %1066 = vmatprep.mubr.f32.mxu0 %v2957_v43  ;;  %1360 = vmatprep.mubr.f32.mxu1 %v3585_v15 }
 0x165   : > { %1405 = vmatprep.subr.mxu0 %v518_v39  ;;  %1835 = vmatprep.subr.mxu1 %v518_v39 }
 0x166   : > { %1067 = vmatmul.mubr.f32.gmra.mxu0 %v2965_v52  ;;  %1361 = vmatmul.mubr.f32.gmra.mxu1 %v3586_v44 }
 0x167   : > { %1406 = vmatpush1.xpose.msra.mxu0 %v517_v31  ;;  %1851 = vmatpush1.xpose.msra.mxu1 %v517_v31 }
 0x168   : > { %1072 = vmatprep.mubr.f32.mxu0 %v2973_v60  ;;  %1365 = vmatprep.mubr.f32.mxu1 %v3587_v48 }
 0x169   : > { %1407 = vmatprep.subr.mxu0 %v512_v37  ;;  %1836 = vmatprep.subr.mxu1 %v512_v37 }
 0x16a   : > { %1073 = vmatmul.mubr.f32.gmra.mxu0 %v2981_v41  ;;  %1366 = vmatmul.mubr.f32.gmra.mxu1 %v3588_v56 }
 0x16b   : > { %1408 = vmatpush1.xpose.msra.mxu0 %v511_v20  ;;  %1852 = vmatpush1.xpose.msra.mxu1 %v511_v20 }
 0x16c   : > { %1078 = vmatprep.mubr.f32.mxu0 %v2989_v0  ;;  %1370 = vmatprep.mubr.f32.mxu1 %v3589_v54 }
 0x16d   : > { %1409 = vmatprep.subr.mxu0 %v506_v45  ;;  %1837 = vmatprep.subr.mxu1 %v506_v45 }
 0x16e   : > { %1079 = vmatmul.mubr.f32.gmra.mxu0 %v2997_v50  ;;  %1371 = vmatmul.mubr.f32.gmra.mxu1 %v3590_v62 }
 0x16f   : > { %1410 = vmatpush1.xpose.msra.mxu0 %v505_v23  ;;  %1853 = vmatpush1.xpose.msra.mxu1 %v505_v23 }
 0x170   : > { %1084 = vmatprep.mubr.f32.mxu0 %v3005_v13  ;;  %1375 = vmatprep.mubr.f32.mxu1 %v3591_v53 }
 0x171   : > { %1411 = vmatprep.subr.mxu0 %v500_v2  ;;  %1838 = vmatprep.subr.mxu1 %v500_v2 }
 0x172   : > { %1085 = vmatmul.mubr.f32.gmra.mxu0 %v301_v17  ;;  %1376 = vmatmul.mubr.f32.gmra.mxu1 %v3592_v16 }
 0x173   : > { %1412 = vmatpush1.xpose.msra.mxu0 %v499_v8  ;;  %1854 = vmatpush1.xpose.msra.mxu1 %v499_v8 }
 0x174   : > { %1445 = vmatprep.mubr.f32.mxu0 %v2659_v4  ;;  %1485 = vmatprep.mubr.f32.mxu1 %v2893_v55 }
 0x176   : > { %v3019_v36 = vpop.f32.mrf.mxu1  ;;  %1446 = vmatmul.mubr.f32.vlgmr.msra.gmra.mxu0 %v2766_v28  ;;  %1486 = vmatmul.mubr.f32.vlgmr.msra.gmra.mxu1 %v2901_v59  ;;  %v3025_v21 = vpop.f32.mrf.mxu0 }
 0x177   : > { %1450 = vmatprep.mubr.f32.mxu0 %v2778_v12  ;;  %1490 = vmatprep.mubr.f32.mxu1 %v2909_v63 }
 0x178   : > { %v3027_v24 = vpop.f32.mrf.mxu1  ;;  %v3035_v4 = vpop.f32.mrf.mxu0 }
 0x17a   : > { %v3029_v32 = vpop.f32.mrf.mxu1  ;;  %1451 = vmatmul.mubr.f32.gmra.mxu0 %v2789_v58  ;;  %1491 = vmatmul.mubr.f32.gmra.mxu1 %v2917_v3  ;;  %v3045_v58 = vpop.f32.mrf.mxu0 }
 0x17b   : > { %1455 = vmatprep.mubr.f32.mxu0 %v2797_v6  ;;  %1495 = vmatprep.mubr.f32.mxu1 %v2925_v11 }
 0x17c   : > { %v3037_v28 = vpop.f32.mrf.mxu1 }
 0x17e   : > { %v3039_v12 = vpop.f32.mrf.mxu1  ;;  %1456 = vmatmul.mubr.f32.gmra.mxu0 %v2805_v10  ;;  %1496 = vmatmul.mubr.f32.gmra.mxu1 %v2933_v19  ;;  %v3055_v10 = vpop.f32.mrf.mxu0 }
 0x17f   : > { %1460 = vmatprep.mubr.f32.mxu0 %v2813_v14  ;;  %1500 = vmatprep.mubr.f32.mxu1 %v2941_v27 }
 0x180   : > { %v3047_v25 = vpop.f32.mrf.mxu1 }
 0x182   : > { %v3049_v6 = vpop.f32.mrf.mxu1  ;;  %1461 = vmatmul.mubr.f32.gmra.mxu0 %v2821_v18  ;;  %1501 = vmatmul.mubr.f32.gmra.mxu1 %v2949_v35  ;;  %v3065_v18 = vpop.f32.mrf.mxu0 }
 0x183   : > { %1465 = vmatprep.mubr.f32.mxu0 %v2829_v22  ;;  %1505 = vmatprep.mubr.f32.mxu1 %v2957_v43 }
 0x184   : > { %v3057_v55 = vpop.f32.mrf.mxu1 }
 0x186   : > { %v3059_v14 = vpop.f32.mrf.mxu1  ;;  %1466 = vmatmul.mubr.f32.gmra.mxu0 %v2837_v26  ;;  %1506 = vmatmul.mubr.f32.gmra.mxu1 %v2965_v52  ;;  %v3075_v26 = vpop.f32.mrf.mxu0 }
 0x187   : > { %1470 = vmatprep.mubr.f32.mxu0 %v2845_v30  ;;  %1510 = vmatprep.mubr.f32.mxu1 %v2973_v60 }
 0x188   : > { %v3067_v7 = vpop.f32.mrf.mxu1 }
 0x18a   : > { %v3069_v22 = vpop.f32.mrf.mxu1  ;;  %1471 = vmatmul.mubr.f32.gmra.mxu0 %v2853_v34  ;;  %1511 = vmatmul.mubr.f32.gmra.mxu1 %v2981_v41  ;;  %v3085_v34 = vpop.f32.mrf.mxu0 }
 0x18b   : > { %1475 = vmatprep.mubr.f32.mxu0 %v2861_v38  ;;  %1515 = vmatprep.mubr.f32.mxu1 %v2989_v0 }
 0x18c   : > { %v3077_v59 = vpop.f32.mrf.mxu1  ;;  %v3092_v63 = vpop.f32.mrf.mxu0 }
 0x18e   : > { %v3079_v30 = vpop.f32.mrf.mxu1  ;;  %1476 = vmatmul.mubr.f32.gmra.mxu0 %v2869_v42  ;;  %1516 = vmatmul.mubr.f32.gmra.mxu1 %v2997_v50  ;;  %v3098_v3 = vpop.f32.mrf.mxu0 }
 0x18f   : > { %1480 = vmatprep.mubr.f32.mxu0 %v2877_v47  ;;  %1520 = vmatprep.mubr.f32.mxu1 %v3005_v13 }
 0x190   : > { %v3087_v40 = vpop.f32.mrf.mxu1  ;;  %v3104_v11 = vpop.f32.mrf.mxu0 }
 0x192   : > { %v3089_v38 = vpop.f32.mrf.mxu1  ;;  %1481 = vmatmul.mubr.f32.gmra.mxu0 %v2885_v51  ;;  %1521 = vmatmul.mubr.f32.gmra.mxu1 %v301_v17  ;;  %v3110_v51 = vpop.f32.mrf.mxu0 }
 0x194   : > { %v3094_v49 = vpop.f32.mrf.mxu1  ;;  %v3116_v1 = vpop.f32.mrf.mxu0 }
 0x196   : > { %v3096_v42 = vpop.f32.mrf.mxu1  ;;  %v3122_v43 = vpop.f32.mrf.mxu0 }
 0x198   : > { %v3100_v47 = vpop.f32.mrf.mxu1  ;;  %v3128_v15 = vpop.f32.mrf.mxu0 }
 0x19a   : > { %v3102_v46 = vpop.f32.mrf.mxu1  ;;  %v3134_v44 = vpop.f32.mrf.mxu0 }
 0x19c   : > { %v3106_v29 = vpop.f32.mrf.mxu1  ;;  %v3140_v48 = vpop.f32.mrf.mxu0 }
 0x19e   : > { %v3108_v19 = vpop.f32.mrf.mxu1  ;;  %v3147_v45 = vpop.f32.mrf.mxu0 }
 0x1a0   : > { %v3112_v57 = vpop.f32.mrf.mxu1  ;;  %v3152_v13 = vpop.f32.mrf.mxu0 }
 0x1a2   : > { %v3114_v27 = vpop.f32.mrf.mxu1  ;;  %v3157_v53 = vpop.f32.mrf.mxu0 }
 0x1a4   : > { %v3118_v35 = vpop.f32.mrf.mxu1 }
 0x1a5   : > { %3593 = vst [vmem:[#allocation6_spill] sm:$0xff] %v3118_v35 }
 0x1a6   : > { %v3120_v33 = vpop.f32.mrf.mxu1 }
 0x1a7   : > { %3594 = vst [vmem:[#allocation7_spill] sm:$0xff] %v3120_v33 }
 0x1a8   : > { %v3124_v39 = vpop.f32.mrf.mxu1 }
 0x1a9   : > { %3595 = vst [vmem:[#allocation8_spill] sm:$0xff] %v3124_v39 }
 0x1aa   : > { %v3126_v52 = vpop.f32.mrf.mxu1 }
 0x1ab   : > { %3596 = vst [vmem:[#allocation9_spill] sm:$0xff] %v3126_v52 }
 0x1ac   : > { %v3130_v31 = vpop.f32.mrf.mxu1 }
 0x1ad   : > { %3597 = vst [vmem:[#allocation10_spill] sm:$0xff] %v3130_v31 }
 0x1ae   : > { %v3132_v60 = vpop.f32.mrf.mxu1 }
 0x1af   : > { %3598 = vst [vmem:[#allocation11_spill] sm:$0xff] %v3132_v60 }
 0x1b0   : > { %v3136_v37 = vpop.f32.mrf.mxu1 }
 0x1b1   : > { %3599 = vst [vmem:[#allocation12_spill] sm:$0xff] %v3136_v37 }
 0x1b2   : > { %v3138_v41 = vpop.f32.mrf.mxu1 }
 0x1b3   : > { %3600 = vst [vmem:[#allocation13_spill] sm:$0xff] %v3138_v41 }
 0x1b4   : > { %v3142_v20 = vpop.f32.mrf.mxu1 }
 0x1b5   : > { %3601 = vst [vmem:[#allocation14_spill] sm:$0xff] %v3142_v20 }
 0x1b6   : > { %v1157_v0 = vpop.f32.mrf.mxu1 }
 0x1b7   : > { %v3145_v56 = vadd.f32 %v1157_v0, %v2781_v61 }
 0x1b8   : > { %v1159_v50 = vpop.f32.mrf.mxu1 }
 0x1b9   : > { %3602 = vst [vmem:[#allocation15_spill] sm:$0xff] %v3145_v56  ;;  %v3162_v56 = vpop.f32.mrf.mxu0 }
 0x1ba   : > { %v1162_v54 = vpop.f32.mrf.mxu1 }
 0x1bb   : > { %v3150_v23 = vadd.f32 %v1162_v54, %v2781_v61 }
 0x1bc   : > { %v1164_v62 = vpop.f32.mrf.mxu1 }
 0x1bd   : > { %3603 = vst [vmem:[#allocation16_spill] sm:$0xff] %v3150_v23  ;;  %v3167_v23 = vpop.f32.mrf.mxu0 }
 0x1be   : > { %v1167_v2 = vpop.f32.mrf.mxu1 }
 0x1bf   : > { %v3155_v17 = vadd.f32 %v1167_v2, %v2781_v61 }
 0x1c0   : > { %v1169_v8 = vpop.f32.mrf.mxu1 }
 0x1c1   : > { %3604 = vst [vmem:[#allocation17_spill] sm:$0xff] %v3155_v17  ;;  %v3172_v17 = vpop.f32.mrf.mxu0 }
 0x1c2   : > { %v1172_v16 = vpop.f32.mrf.mxu1 }
 0x1c3   : > { %v3160_v0 = vadd.f32 %v1172_v16, %v2781_v61 }
 0x1c4   : > { %v1174_v50 = vpop.f32.mrf.mxu1 }
 0x1c5   : > { %3605 = vst [vmem:[#allocation18_spill] sm:$0xff] %v3160_v0  ;;  %v3177_v0 = vpop.f32.mrf.mxu0 }
 0x1c6   : > { %v1177_v20 = vpop.f32.mrf.mxu1 }
 0x1c7   : > { %v3165_v54 = vadd.f32 %v1177_v20, %v2781_v61 }
 0x1c8   : > { %v1179_v62 = vpop.f32.mrf.mxu1 }
 0x1c9   : > { %3606 = vst [vmem:[#allocation19_spill] sm:$0xff] %v3165_v54  ;;  %v3182_v54 = vpop.f32.mrf.mxu0 }
 0x1ca   : > { %v1182_v41 = vpop.f32.mrf.mxu1 }
 0x1cb   : > { %v3170_v2 = vadd.f32 %v1182_v41, %v2781_v61 }
 0x1cc   : > { %v1184_v8 = vpop.f32.mrf.mxu1 }
 0x1cd   : > { %3607 = vst [vmem:[#allocation20_spill] sm:$0xff] %v3170_v2  ;;  %v3187_v2 = vpop.f32.mrf.mxu0 }
 0x1ce   : > { %v1187_v37 = vpop.f32.mrf.mxu1 }
 0x1cf   : > { %v3175_v16 = vadd.f32 %v1187_v37, %v2781_v61 }
 0x1d0   : > { %v1189_v50 = vpop.f32.mrf.mxu1 }
 0x1d1   : > { %3608 = vst [vmem:[#allocation21_spill] sm:$0xff] %v3175_v16  ;;  %v3192_v16 = vpop.f32.mrf.mxu0 }
 0x1d2   : > { %v1192_v60 = vpop.f32.mrf.mxu1 }
 0x1d3   : > { %v3180_v20 = vadd.f32 %v1192_v60, %v2781_v61 }
 0x1d4   : > { %v1194_v62 = vpop.f32.mrf.mxu1 }
 0x1d5   : > { %3609 = vst [vmem:[#allocation22_spill] sm:$0xff] %v3180_v20  ;;  %v3197_v20 = vpop.f32.mrf.mxu0 }
 0x1d6   : > { %v1197_v31 = vpop.f32.mrf.mxu1  ;;  %3613 = vst [vmem:[#allocation26_spill] sm:$0xff] %v3197_v20  ;;  %v599_v20 = vsub.s32 1, %v2760_v5 }
 0x1d7   : > { %v3185_v41 = vadd.f32 %v1197_v31, %v2781_v61 }
 0x1d8   : > { %v1199_v8 = vpop.f32.mrf.mxu1 }
 0x1d9   : > { %3610 = vst [vmem:[#allocation23_spill] sm:$0xff] %v3185_v41  ;;  %v3202_v41 = vpop.f32.mrf.mxu0 }
 0x1da   : > { %v1202_v52 = vpop.f32.mrf.mxu1 }
 0x1db   : > { %v3190_v37 = vadd.f32 %v1202_v52, %v2781_v61 }
 0x1dc   : > { %v1204_v50 = vpop.f32.mrf.mxu1 }
 0x1dd   : > { %3611 = vst [vmem:[#allocation24_spill] sm:$0xff] %v3190_v37  ;;  %v3207_v37 = vpop.f32.mrf.mxu0 }
 0x1de   : > { %v1207_v39 = vpop.f32.mrf.mxu1  ;;  %3616 = vst [vmem:[#allocation29_spill] sm:$0xff] %v3207_v37 }
 0x1df   : > { %v3195_v60 = vadd.f32 %v1207_v39, %v2781_v61  ;;  %v595_v39 = vsub.s32 0, %v2760_v5 }
 0x1e0   : > { %v1209_v62 = vpop.f32.mrf.mxu1 }
 0x1e1   : > { %3612 = vst [vmem:[#allocation25_spill] sm:$0xff] %v3195_v60 }
 0x1e2   : > { %v1212_v33 = vpop.f32.mrf.mxu1 }
 0x1e3   : > { %v3200_v31 = vadd.f32 %v1212_v33, %v2781_v61  ;;  %v3214_v33 = vpop.f32.mrf.mxu0 }
 0x1e4   : > { %v1214_v8 = vpop.f32.mrf.mxu1  ;;  %3618 = vst [vmem:[#allocation31_spill] sm:$0xff] %v3214_v33 }
 0x1e5   : > { %3614 = vst [vmem:[#allocation27_spill] sm:$0xff] %v3200_v31  ;;  %v3217_v8 = vrot.slane %v2773_v9, %v595_v39  ;;  %v3225_v37 = vpop.f32.mrf.mxu0 }
 0x1e6   : > { %v1217_v35 = vpop.f32.mrf.mxu1  ;;  %3620 = vst [vmem:[#allocation33_spill] sm:$0xff] %v3225_v37 }
 0x1e7   : > { %v3205_v52 = vadd.f32 %v1217_v35, %v2781_v61  ;;  %v3234_v33 = vpop.f32.mrf.mxu0 }
 0x1e8   : > { %v1219_v50 = vpop.f32.mrf.mxu1  ;;  %3622 = vst [vmem:[#allocation35_spill] sm:$0xff] %v3234_v33 }
 0x1e9   : > { %3615 = vst [vmem:[#allocation28_spill] sm:$0xff] %v3205_v52  ;;  %v3220_v52 = vrot.slane %v2773_v9, %v599_v20 }
 0x1ea   : > { %v1222_v60 = vpop.f32.mrf.mxu1 }
 0x1eb   : > { %v3212_v62 = vadd.f32 %v1222_v60, %v2781_v61  ;;  %v675_v60 = vadd.f32 %v3025_v21, %v3217_v8 }
 0x1ec   : > { %v1224_v31 = vpop.f32.mrf.mxu1 }
 0x1ed   : > { %3617 = vst [vmem:[#allocation30_spill] sm:$0xff] %v3212_v62  ;;  %v677_v31 = vadd.f32 %v3035_v4, %v3220_v52  ;;  %v836_v20 = vadd.f32 %v3019_v36, %v675_v60  ;;  %v683_v4 = vadd.f32 %v3055_v10, %v3220_v52 }
 0x1ee   : > { %v1227_v35 = vpop.f32.mrf.mxu1 }
 0x1ef   : > { %v3223_v50 = vadd.f32 %v1227_v35, %v2781_v61  ;;  %v681_v35 = vadd.f32 %v3045_v58, %v3217_v8  ;;  %v838_v21 = vadd.f32 %v3027_v24, %v677_v31  ;;  %v689_v24 = vadd.f32 %v3075_v26, %v3220_v52 }
 0x1f0   : > { %v1229_v5 = vpop.f32.mrf.mxu1 }
 0x1f1   : > { %3619 = vst [vmem:[#allocation32_spill] sm:$0xff] %v3223_v50 }
 0x1f2   : > { %v1232_v62 = vpop.f32.mrf.mxu1 }
 0x1f3   : > { %v3232_v39 = vadd.f32 %v1232_v62, %v2781_v61 }
 0x1f4   : > { %v1234_v9 = vpop.f32.mrf.mxu1 }
 0x1f5   : > { %3621 = vst [vmem:[#allocation34_spill] sm:$0xff] %v3232_v39  ;;  %v842_v39 = vadd.f32 %v3029_v32, %v681_v35  ;;  %v687_v9 = vadd.f32 %v3065_v18, %v3217_v8 }
 0x1f6   : > { %v996_v5 = vpop.f32.mrf.mxu0  ;;  %v3240_v50 = vpop.f32.mrf.mxu1 }
 0x1f7   : > { %3623 = vst [vmem:[#allocation36_spill] sm:$0xff] %v3240_v50  ;;  %v997_v37 = vadd.f32 %v996_v5, %v836_v20  ;;  %v844_v50 = vadd.f32 %v3037_v28, %v683_v4  ;;  %v693_v20 = vadd.f32 %v3085_v34, %v3217_v8  ;;  %v699_v34 = vadd.f32 %v3098_v3, %v3217_v8 }
 0x1f8   : > { %v998_v61 = vpop.f32.mrf.mxu0  ;;  %v1304_v62 = vpop.f32.mrf.mxu1  ;;  %v705_v3 = vadd.f32 %v3110_v51, %v3217_v8  ;;  %v711_v51 = vadd.f32 %v3122_v43, %v3217_v8  ;;  %v717_v43 = vadd.f32 %v3134_v44, %v3217_v8  ;;  %v723_v44 = vadd.f32 %v3147_v45, %v3217_v8 }
 0x1f9   : > { %v1526_v36 = vmax.f32 %v997_v37, 0.0  ;;  %v999_v60 = vadd.f32 %v998_v61, %v838_v21  ;;  %v848_v37 = vadd.f32 %v3039_v12, %v687_v9  ;;  %v850_v21 = vadd.f32 %v3047_v25, %v689_v24 }
 0x1fa   : > { %v1002_v33 = vpop.f32.mrf.mxu0  ;;  %v3248_v58 = vpop.f32.mrf.mxu1  ;;  %v854_v62 = vadd.f32 %v3049_v6, %v693_v20  ;;  %v729_v45 = vadd.f32 %v3157_v53, %v3217_v8  ;;  %v735_v53 = vadd.f32 %v3167_v23, %v3217_v8  ;;  %v741_v23 = vadd.f32 %v3177_v0, %v3217_v8 }
 0x1fb   : > { %1574 = vst [vmem:[%s3253_s27] sm:$0xff] %v1526_v36  ;;  %v1527_v32 = vmax.f32 %v999_v60, 0.0  ;;  %v1003_v10 = vadd.f32 %v1002_v33, %v842_v39  ;;  %v695_v33 = vadd.f32 %v3092_v63, %v3220_v52  ;;  %v701_v63 = vadd.f32 %v3104_v11, %v3220_v52 }
 0x1fc   : > { %v1004_v31 = vpop.f32.mrf.mxu0  ;;  %v1309_v18 = vpop.f32.mrf.mxu1  ;;  %v707_v11 = vadd.f32 %v3116_v1, %v3220_v52  ;;  %v713_v1 = vadd.f32 %v3128_v15, %v3220_v52  ;;  %v719_v15 = vadd.f32 %v3140_v48, %v3220_v52  ;;  %v725_v48 = vadd.f32 %v3152_v13, %v3220_v52 }
 0x1fd   : > { %1575 = vst [vmem:[%s3253_s27 + $0x8] sm:$0xff] %v1527_v32  ;;  %v1529_v28 = vmax.f32 %v1003_v10, 0.0  ;;  %v1005_v35 = vadd.f32 %v1004_v31, %v844_v50  ;;  %v856_v60 = vadd.f32 %v3057_v55, %v695_v33  ;;  %v860_v31 = vadd.f32 %v3059_v14, %v699_v34 }
 0x1fe   : > { %v1008_v26 = vpop.f32.mrf.mxu0  ;;  %v3260_v5 = vpop.f32.mrf.mxu1  ;;  %v866_v33 = vadd.f32 %v3069_v22, %v705_v3  ;;  %v731_v13 = vadd.f32 %v3162_v56, %v3220_v52  ;;  %v737_v56 = vadd.f32 %v3172_v17, %v3220_v52  ;;  %v743_v17 = vadd.f32 %v3182_v54, %v3220_v52 }
 0x1ff   : > { %1577 = vst [vmem:[%s3253_s27 + $0x18] sm:$0xff] %v1529_v28  ;;  %v1530_v39 = vmax.f32 %v1005_v35, 0.0  ;;  %v1009_v4 = vadd.f32 %v1008_v26, %v848_v37  ;;  %v862_v28 = vadd.f32 %v3067_v7, %v701_v63  ;;  %v747_v0 = vadd.f32 %v3187_v2, %v3217_v8  ;;  %v3626_v2 = vld [vmem:[#allocation26_spill] sm:$0xff] }
 0x200   : > { %v1010_v12 = vpop.f32.mrf.mxu0  ;;  %v1314_v61 = vpop.f32.mrf.mxu1  ;;  %v749_v54 = vadd.f32 %v3192_v16, %v3220_v52  ;;  %v755_v16 = vadd.f32 %v3202_v41, %v3220_v52  ;;  %v3631_v41 = vld [vmem:[#allocation31_spill] sm:$0xff] }
 0x201   : > { %1578 = vst [vmem:[%s3253_s27 + $0x20] sm:$0xff] %v1530_v39  ;;  %v1532_v50 = vmax.f32 %v1009_v4, 0.0  ;;  %v1011_v9 = vadd.f32 %v1010_v12, %v850_v21  ;;  %v868_v61 = vadd.f32 %v3077_v59, %v707_v11 }
 0x202   : > { %v1014_v36 = vpop.f32.mrf.mxu0  ;;  %v3270_v25 = vpop.f32.mrf.mxu1 }
 0x203   : > { %1580 = vst [vmem:[%s3253_s27 + $0x30] sm:$0xff] %v1532_v50  ;;  %v1533_v24 = vmax.f32 %v1011_v9, 0.0  ;;  %v1015_v32 = vadd.f32 %v1014_v36, %v854_v62  ;;  %v872_v9 = vadd.f32 %v3079_v30, %v711_v51  ;;  %v886_v51 = vadd.f32 %v3100_v47, %v725_v48 }
 0x204   : > { %v1016_v6 = vpop.f32.mrf.mxu0  ;;  %v1319_v10 = vpop.f32.mrf.mxu1 }
 0x205   : > { %1581 = vst [vmem:[%s3253_s27 + $0x38] sm:$0xff] %v1533_v24  ;;  %v1535_v18 = vmax.f32 %v1015_v32, 0.0  ;;  %v1017_v37 = vadd.f32 %v1016_v6, %v856_v60  ;;  %v874_v24 = vadd.f32 %v3087_v40, %v713_v1 }
 0x206   : > { %v1020_v20 = vpop.f32.mrf.mxu0  ;;  %v3280_v55 = vpop.f32.mrf.mxu1 }
 0x207   : > { %1583 = vst [vmem:[%s3253_s27 + $0x48] sm:$0xff] %v1535_v18  ;;  %v1536_v35 = vmax.f32 %v1017_v37, 0.0  ;;  %v1021_v26 = vadd.f32 %v1020_v20, %v860_v31  ;;  %v878_v31 = vadd.f32 %v3089_v38, %v717_v43  ;;  %v880_v20 = vadd.f32 %v3094_v49, %v719_v15 }
 0x208   : > { %v1022_v14 = vpop.f32.mrf.mxu0  ;;  %v1324_v21 = vpop.f32.mrf.mxu1  ;;  %v898_v15 = vadd.f32 %v3112_v57, %v737_v56 }
 0x209   : > { %1584 = vst [vmem:[%s3253_s27 + $0x50] sm:$0xff] %v1536_v35  ;;  %v1538_v39 = vmax.f32 %v1021_v26, 0.0  ;;  %v1023_v4 = vadd.f32 %v1022_v14, %v862_v28  ;;  %v884_v26 = vadd.f32 %v3096_v42, %v723_v44 }
 0x20a   : > { %v1026_v12 = vpop.f32.mrf.mxu0  ;;  %v3290_v7 = vpop.f32.mrf.mxu1 }
 0x20b   : > { %1586 = vst [vmem:[%s3253_s27 + $0x60] sm:$0xff] %v1538_v39  ;;  %v1539_v62 = vmax.f32 %v1023_v4, 0.0  ;;  %v1027_v34 = vadd.f32 %v1026_v12, %v866_v33 }
 0x20c   : > { %v1028_v22 = vpop.f32.mrf.mxu0  ;;  %v1329_v50 = vpop.f32.mrf.mxu1 }
 0x20d   : > { %1587 = vst [vmem:[%s3253_s27 + $0x68] sm:$0xff] %v1539_v62  ;;  %v1541_v36 = vmax.f32 %v1027_v34, 0.0  ;;  %v1029_v60 = vadd.f32 %v1028_v22, %v868_v61  ;;  %v890_v61 = vadd.f32 %v3102_v46, %v729_v45  ;;  %v892_v22 = vadd.f32 %v3106_v29, %v731_v13 }
 0x20e   : > { %v1032_v63 = vpop.f32.mrf.mxu0  ;;  %v3300_v59 = vpop.f32.mrf.mxu1 }
 0x20f   : > { %1589 = vst [vmem:[%s3253_s27 + $0x78] sm:$0xff] %v1541_v36  ;;  %v1542_v32 = vmax.f32 %v1029_v60, 0.0  ;;  %v1033_v6 = vadd.f32 %v1032_v63, %v872_v9  ;;  %v896_v36 = vadd.f32 %v3108_v19, %v735_v53  ;;  %v3629_v53 = vld [vmem:[#allocation29_spill] sm:$0xff] }
 0x210   : > { %v1034_v30 = vpop.f32.mrf.mxu0  ;;  %v1334_v10 = vpop.f32.mrf.mxu1 }
 0x211   : > { %1590 = vst [vmem:[%s3253_s27 + $0x80] sm:$0xff] %v1542_v32  ;;  %v1544_v3 = vmax.f32 %v1033_v6, 0.0  ;;  %v1035_v18 = vadd.f32 %v1034_v30, %v874_v24  ;;  %v902_v10 = vadd.f32 %v3114_v27, %v741_v23 }
 0x212   : > { %v1038_v37 = vpop.f32.mrf.mxu0  ;;  %v3310_v40 = vpop.f32.mrf.mxu1 }
 0x213   : > { %1592 = vst [vmem:[%s3253_s27 + $0x90] sm:$0xff] %v1544_v3  ;;  %v1545_v28 = vmax.f32 %v1035_v18, 0.0  ;;  %v1039_v11 = vadd.f32 %v1038_v37, %v878_v31  ;;  %v3624_v18 = vld [vmem:[#allocation6_spill] sm:$0xff] }
 0x214   : > { %v1040_v38 = vpop.f32.mrf.mxu0  ;;  %v1339_v35 = vpop.f32.mrf.mxu1  ;;  %v904_v37 = vadd.f32 %v3624_v18, %v743_v17 }
 0x215   : > { %1593 = vst [vmem:[%s3253_s27 + $0x98] sm:$0xff] %v1545_v28  ;;  %v1547_v14 = vmax.f32 %v1039_v11, 0.0  ;;  %v1041_v21 = vadd.f32 %v1040_v38, %v880_v20  ;;  %v3625_v11 = vld [vmem:[#allocation7_spill] sm:$0xff]  ;;  %v753_v35 = vadd.f32 %v3626_v2, %v3217_v8 }
 0x216   : > { %v1044_v33 = vpop.f32.mrf.mxu0  ;;  %v3320_v49 = vpop.f32.mrf.mxu1  ;;  %v908_v38 = vadd.f32 %v3625_v11, %v747_v0 }
 0x217   : > { %1595 = vst [vmem:[%s3253_s27 + $0xa8] sm:$0xff] %v1547_v14  ;;  %v1548_v39 = vmax.f32 %v1041_v21, 0.0  ;;  %v1045_v4 = vadd.f32 %v1044_v33, %v884_v26  ;;  %v3627_v33 = vld [vmem:[#allocation8_spill] sm:$0xff] }
 0x218   : > { %v1046_v42 = vpop.f32.mrf.mxu0  ;;  %v1344_v12 = vpop.f32.mrf.mxu1 }
 0x219   : > { %1596 = vst [vmem:[%s3253_s27 + $0xb0] sm:$0xff] %v1548_v39  ;;  %v1550_v1 = vmax.f32 %v1045_v4, 0.0  ;;  %v1047_v62 = vadd.f32 %v1046_v42, %v886_v51  ;;  %v910_v51 = vadd.f32 %v3627_v33, %v749_v54  ;;  %v3628_v12 = vld [vmem:[#allocation9_spill] sm:$0xff]  ;;  %v3639_v33 = vld [vmem:[#allocation36_spill] sm:$0xff] }
 0x21a   : > { %v1050_v34 = vpop.f32.mrf.mxu0  ;;  %v3330_v47 = vpop.f32.mrf.mxu1 }
 0x21b   : > { %1598 = vst [vmem:[%s3253_s27 + $0xc0] sm:$0xff] %v1550_v1  ;;  %v1551_v50 = vmax.f32 %v1047_v62, 0.0  ;;  %v1051_v9 = vadd.f32 %v1050_v34, %v890_v61  ;;  %v914_v61 = vadd.f32 %v3628_v12, %v753_v35  ;;  %v759_v1 = vadd.f32 %v3629_v53, %v3217_v8 }
 0x21c   : > { %v1052_v46 = vpop.f32.mrf.mxu0  ;;  %v1349_v43 = vpop.f32.mrf.mxu1 }
 0x21d   : > { %1599 = vst [vmem:[%s3253_s27 + $0xc8] sm:$0xff] %v1551_v50  ;;  %v1553_v60 = vmax.f32 %v1051_v9, 0.0  ;;  %v1053_v63 = vadd.f32 %v1052_v46, %v892_v22  ;;  %v3630_v50 = vld [vmem:[#allocation10_spill] sm:$0xff]  ;;  %v761_v46 = vadd.f32 %v3631_v41, %v3220_v52 }
 0x21e   : > { %v1056_v24 = vpop.f32.mrf.mxu0  ;;  %v3340_v29 = vpop.f32.mrf.mxu1  ;;  %v916_v9 = vadd.f32 %v3630_v50, %v755_v16  ;;  %v3640_v16 = vld [vmem:[#allocation23_spill] sm:$0xff] }
 0x21f   : > { %1601 = vst [vmem:[%s3253_s27 + $0xd8] sm:$0xff] %v1553_v60  ;;  %v1554_v32 = vmax.f32 %v1053_v63, 0.0  ;;  %v1057_v6 = vadd.f32 %v1056_v24, %v896_v36  ;;  %v3632_v63 = vld [vmem:[#allocation11_spill] sm:$0xff] }
 0x220   : > { %v1058_v19 = vpop.f32.mrf.mxu0  ;;  %v1354_v30 = vpop.f32.mrf.mxu1  ;;  %v920_v24 = vadd.f32 %v3632_v63, %v759_v1 }
 0x221   : > { %1602 = vst [vmem:[%s3253_s27 + $0xe0] sm:$0xff] %v1554_v32  ;;  %v1556_v31 = vmax.f32 %v1057_v6, 0.0  ;;  %v1059_v44 = vadd.f32 %v1058_v19, %v898_v15  ;;  %v3633_v15 = vld [vmem:[#allocation33_spill] sm:$0xff] }
 0x222   : > { %v1062_v3 = vpop.f32.mrf.mxu0  ;;  %v3350_v57 = vpop.f32.mrf.mxu1  ;;  %v765_v17 = vadd.f32 %v3633_v15, %v3217_v8  ;;  %v3643_v15 = vld [vmem:[#allocation17_spill] sm:$0xff] }
 0x223   : > { %1604 = vst [vmem:[%s3253_s27 + $0xf0] sm:$0xff] %v1556_v31  ;;  %v1557_v20 = vmax.f32 %v1059_v44, 0.0  ;;  %v1063_v48 = vadd.f32 %v1062_v3, %v902_v10  ;;  %v3634_v10 = vld [vmem:[#allocation12_spill] sm:$0xff]  ;;  %v3635_v31 = vld [vmem:[#allocation35_spill] sm:$0xff] }
 0x224   : > { %v1064_v27 = vpop.f32.mrf.mxu0  ;;  %v1359_v28 = vpop.f32.mrf.mxu1  ;;  %v922_v0 = vadd.f32 %v3634_v10, %v761_v46  ;;  %v767_v44 = vadd.f32 %v3635_v31, %v3220_v52 }
 0x225   : > { %1605 = vst [vmem:[%s3253_s27 + $0xf8] sm:$0xff] %v1557_v20  ;;  %v1559_v26 = vmax.f32 %v1063_v48, 0.0  ;;  %v1065_v45 = vadd.f32 %v1064_v27, %v904_v37  ;;  %v3636_v20 = vld [vmem:[#allocation13_spill] sm:$0xff] }
 0x226   : > { %v1068_v14 = vpop.f32.mrf.mxu0  ;;  %v3360_v21 = vpop.f32.mrf.mxu1  ;;  %v926_v8 = vadd.f32 %v3636_v20, %v765_v17  ;;  %v1313_v17 = vadd.f32 %v3260_v5, %v3643_v15  ;;  %v3653_v15 = vld [vmem:[#allocation22_spill] sm:$0xff] }
 0x227   : > { %1607 = vst [vmem:[%s3253_s27 + $0x108] sm:$0xff] %v1559_v26  ;;  %v1560_v13 = vmax.f32 %v1065_v45, 0.0  ;;  %v1069_v39 = vadd.f32 %v1068_v14, %v908_v38  ;;  %v3637_v38 = vld [vmem:[#allocation14_spill] sm:$0xff]  ;;  %v3638_v14 = vld [vmem:[#allocation15_spill] sm:$0xff] }
 0x228   : > { %v1070_v4 = vpop.f32.mrf.mxu0  ;;  %v1364_v42 = vpop.f32.mrf.mxu1  ;;  %v928_v2 = vadd.f32 %v3637_v38, %v767_v44 }
 0x229   : > { %1608 = vst [vmem:[%s3253_s27 + $0x110] sm:$0xff] %v1560_v13  ;;  %v1562_v62 = vmax.f32 %v1069_v39, 0.0  ;;  %v1071_v34 = vadd.f32 %v1070_v4, %v910_v51  ;;  %v1303_v51 = vadd.f32 %v3639_v33, %v3638_v14  ;;  %v1343_v13 = vadd.f32 %v3320_v49, %v3640_v16 }
 0x22a   : > { %v1074_v22 = vpop.f32.mrf.mxu0  ;;  %v3370_v56 = vpop.f32.mrf.mxu1 }
 0x22b   : > { %1610 = vst [vmem:[%s3253_s27 + $0x120] sm:$0xff] %v1562_v62  ;;  %v1563_v43 = vmax.f32 %v1071_v34, 0.0  ;;  %v1075_v36 = vadd.f32 %v1074_v22, %v914_v61  ;;  %v3641_v22 = vld [vmem:[#allocation16_spill] sm:$0xff] }
 0x22c   : > { %v1076_v23 = vpop.f32.mrf.mxu0  ;;  %v1369_v60 = vpop.f32.mrf.mxu1  ;;  %v1308_v50 = vadd.f32 %v3248_v58, %v3641_v22  ;;  %v3644_v58 = vld [vmem:[#allocation25_spill] sm:$0xff] }
 0x22d   : > { %1611 = vst [vmem:[%s3253_s27 + $0x128] sm:$0xff] %v1563_v43  ;;  %v1565_v32 = vmax.f32 %v1075_v36, 0.0  ;;  %v1077_v6 = vadd.f32 %v1076_v23, %v916_v9  ;;  %v3642_v9 = vld [vmem:[#allocation24_spill] sm:$0xff] }
 0x22e   : > { %v1080_v19 = vpop.f32.mrf.mxu0  ;;  %v3380_v30 = vpop.f32.mrf.mxu1  ;;  %v1348_v41 = vadd.f32 %v3330_v47, %v3642_v9  ;;  %v3651_v9 = vld [vmem:[#allocation21_spill] sm:$0xff] }
 0x22f   : > { %1613 = vst [vmem:[%s3253_s27 + $0x138] sm:$0xff] %v1565_v32  ;;  %v1566_v3 = vmax.f32 %v1077_v6, 0.0  ;;  %v1081_v18 = vadd.f32 %v1080_v19, %v920_v24  ;;  %v1353_v32 = vadd.f32 %v3340_v29, %v3644_v58 }
 0x230   : > { %v1082_v37 = vpop.f32.mrf.mxu0  ;;  %v1374_v54 = vpop.f32.mrf.mxu1 }
 0x231   : > { %1614 = vst [vmem:[%s3253_s27 + $0x140] sm:$0xff] %v1566_v3  ;;  %v1568_v48 = vmax.f32 %v1081_v18, 0.0  ;;  %v1083_v27 = vadd.f32 %v1082_v37, %v922_v0  ;;  %v3645_v18 = vld [vmem:[#allocation18_spill] sm:$0xff]  ;;  %v3646_v54 = vld [vmem:[#allocation27_spill] sm:$0xff] }
 0x232   : > { %v1086_v28 = vpop.f32.mrf.mxu0  ;;  %v3388_v11 = vpop.f32.mrf.mxu1  ;;  %v1318_v37 = vadd.f32 %v3270_v25, %v3645_v18  ;;  %v1358_v5 = vadd.f32 %v3350_v57, %v3646_v54  ;;  %v1652_v54 = vld [vmem:[%s3253_s27 + $0x20] sm:$0xff] (%p3655_p10) }
 0x233   : > { %1616 = vst [vmem:[%s3253_s27 + $0x150] sm:$0xff] %v1568_v48  ;;  %v1569_v35 = vmax.f32 %v1083_v27, 0.0  ;;  %v1087_v52 = vadd.f32 %v1086_v28, %v926_v8  ;;  %1653 = vst [vmem:[%s3455_s11 + $0x38] sm:$0xff] (%p3655_p10), %v1652_v54 }
 0x234   : > { %v1088_v26 = vpop.f32.mrf.mxu0  ;;  %v1379_v45 = vpop.f32.mrf.mxu1 }
 0x235   : > { %1617 = vst [vmem:[%s3253_s27 + $0x158] sm:$0xff] %v1569_v35  ;;  %v1571_v39 = vmax.f32 %v1087_v52, 0.0  ;;  %v1089_v4 = vadd.f32 %v1088_v26, %v928_v2  ;;  %v3647_v35 = vld [vmem:[#allocation19_spill] sm:$0xff]  ;;  %v3648_v26 = vld [vmem:[#allocation28_spill] sm:$0xff] }
 0x236   : > { %v1447_v42 = vpop.f32.mrf.mxu0  ;;  %v1487_v12 = vpop.f32.mrf.mxu1  ;;  %v1323_v52 = vadd.f32 %v3280_v55, %v3647_v35  ;;  %v1363_v25 = vadd.f32 %v3360_v21, %v3648_v26  ;;  %v1676_v26 = vld [vmem:[%s3253_s27 + $0x80] sm:$0xff] (%p3655_p10) }
 0x237   : > { %1619 = vst [vmem:[%s3253_s27 + $0x168] sm:$0xff] %v1571_v39  ;;  %v1572_v61 = vmax.f32 %v1089_v4, 0.0  ;;  %v1448_v53 = vadd.f32 %v1447_v42, %v1303_v51  ;;  %v1488_v1 = vadd.f32 %v1487_v12, %v1343_v13  ;;  %v3649_v4 = vld [vmem:[#allocation20_spill] sm:$0xff]  ;;  %v3650_v12 = vld [vmem:[#allocation30_spill] sm:$0xff]  ;;  %1677 = vst [vmem:[%s3455_s11 + $0xf8] sm:$0xff] (%p3655_p10), %v1676_v26 }
 0x238   : > { %v1449_v62 = vpop.f32.mrf.mxu0  ;;  %v1489_v34 = vpop.f32.mrf.mxu1  ;;  %v1328_v42 = vadd.f32 %v3290_v7, %v3649_v4  ;;  %v1368_v55 = vadd.f32 %v3370_v56, %v3650_v12  ;;  %v1700_v12 = vld [vmem:[%s3253_s27 + $0xe0] sm:$0xff] (%p3655_p10) }
 0x239   : > { %1620 = vst [vmem:[%s3253_s27 + $0x170] sm:$0xff] %v1572_v61  ;;  %v1528_v49 = vmax.f32 %v1448_v53, 0.0  ;;  %v1552_v46 = vmax.f32 %v1488_v1, 0.0  ;;  %1701 = vst [vmem:[%s3455_s11 + $0x1b8] sm:$0xff] (%p3655_p10), %v1700_v12 }
 0x23a   : > { %v1452_v43 = vpop.f32.mrf.mxu0  ;;  %v1492_v36 = vpop.f32.mrf.mxu1 }
 0x23b   : > { %1576 = vst [vmem:[%s3253_s27 + $0x10] sm:$0xff] %v1528_v49  ;;  %1600 = vst [vmem:[%s3253_s27 + $0xd0] sm:$0xff] %v1552_v46  ;;  %v1453_v23 = vadd.f32 %v1452_v43, %v1308_v50  ;;  %v1493_v60 = vadd.f32 %v1492_v36, %v1348_v41  ;;  %v1333_v41 = vadd.f32 %v3300_v59, %v3651_v9  ;;  %v3652_v49 = vld [vmem:[#allocation32_spill] sm:$0xff] }
 0x23c   : > { %v1454_v63 = vpop.f32.mrf.mxu0  ;;  %v1494_v24 = vpop.f32.mrf.mxu1  ;;  %v1373_v7 = vadd.f32 %v3380_v30, %v3652_v49  ;;  %v1338_v59 = vadd.f32 %v3310_v40, %v3653_v15  ;;  %v1644_v40 = vld [vmem:[%s3253_s27] sm:$0xff] (%p3655_p10) }
 0x23d   : > { %v1531_v47 = vmax.f32 %v1453_v23, 0.0  ;;  %v1555_v6 = vmax.f32 %v1493_v60, 0.0  ;;  %1645 = vst [vmem:[%s3455_s11] sm:$0xff] (%p3655_p10), %v1644_v40  ;;  %v1724_v49 = vld [vmem:[%s3253_s27 + $0x140] sm:$0xff] (%p3655_p10) }
 0x23e   : > { %v1457_v19 = vpop.f32.mrf.mxu0  ;;  %v1497_v10 = vpop.f32.mrf.mxu1  ;;  %1725 = vst [vmem:[%s3455_s11 + $0x278] sm:$0xff] (%p3655_p10), %v1724_v49 }
 0x23f   : > { %1579 = vst [vmem:[%s3253_s27 + $0x28] sm:$0xff] %v1531_v47  ;;  %1603 = vst [vmem:[%s3253_s27 + $0xe8] sm:$0xff] %v1555_v6  ;;  %v1458_v0 = vadd.f32 %v1457_v19, %v1313_v17  ;;  %v1498_v31 = vadd.f32 %v1497_v10, %v1353_v32  ;;  %v3654_v17 = vld [vmem:[#allocation34_spill] sm:$0xff] }
 0x240   : > { %v1459_v44 = vpop.f32.mrf.mxu0  ;;  %v1499_v3 = vpop.f32.mrf.mxu1  ;;  %v1378_v30 = vadd.f32 %v3388_v11, %v3654_v17  ;;  %v1646_v11 = vld [vmem:[%s3253_s27 + $0x8] sm:$0xff] (%p3655_p10) }
 0x241   : > { %v1534_v20 = vmax.f32 %v1458_v0, 0.0  ;;  %v1558_v29 = vmax.f32 %v1498_v31, 0.0  ;;  %1647 = vst [vmem:[%s3455_s11 + $0x8] sm:$0xff] (%p3655_p10), %v1646_v11 }
 0x242   : > { %v1462_v8 = vpop.f32.mrf.mxu0  ;;  %v1502_v48 = vpop.f32.mrf.mxu1  ;;  %v1648_v18 = vld [vmem:[%s3253_s27 + $0x10] sm:$0xff] (%p3655_p10) }
 0x243   : > { %1582 = vst [vmem:[%s3253_s27 + $0x40] sm:$0xff] %v1534_v20  ;;  %1606 = vst [vmem:[%s3253_s27 + $0x100] sm:$0xff] %v1558_v29  ;;  %v1463_v27 = vadd.f32 %v1462_v8, %v1318_v37  ;;  %v1503_v28 = vadd.f32 %v1502_v48, %v1358_v5  ;;  %v1650_v37 = vld [vmem:[%s3253_s27 + $0x18] sm:$0xff] (%p3655_p10)  ;;  %v1656_v20 = vld [vmem:[%s3253_s27 + $0x30] sm:$0xff] (%p3655_p10) }
 0x244   : > { %v1464_v38 = vpop.f32.mrf.mxu0  ;;  %v1504_v2 = vpop.f32.mrf.mxu1  ;;  %v1658_v29 = vld [vmem:[%s3253_s27 + $0x38] sm:$0xff] (%p3655_p10)  ;;  %1649 = vst [vmem:[%s3455_s11 + $0x10] sm:$0xff] (%p3655_p10), %v1648_v18  ;;  %1651 = vst [vmem:[%s3455_s11 + $0x30] sm:$0xff] (%p3655_p10), %v1650_v37  ;;  %v1662_v48 = vld [vmem:[%s3253_s27 + $0x48] sm:$0xff] (%p3655_p10) }
 0x245   : > { %v1537_v45 = vmax.f32 %v1463_v27, 0.0  ;;  %v1561_v57 = vmax.f32 %v1503_v28, 0.0  ;;  %1657 = vst [vmem:[%s3455_s11 + $0x60] sm:$0xff] (%p3655_p10), %v1656_v20  ;;  %1659 = vst [vmem:[%s3455_s11 + $0x68] sm:$0xff] (%p3655_p10), %v1658_v29  ;;  %v1664_v27 = vld [vmem:[%s3253_s27 + $0x50] sm:$0xff] (%p3655_p10)  ;;  %v1668_v38 = vld [vmem:[%s3253_s27 + $0x60] sm:$0xff] (%p3655_p10) }
 0x246   : > { %v1467_v14 = vpop.f32.mrf.mxu0  ;;  %v1507_v33 = vpop.f32.mrf.mxu1  ;;  %v1654_v5 = vld [vmem:[%s3253_s27 + $0x28] sm:$0xff] (%p3655_p10)  ;;  %1663 = vst [vmem:[%s3455_s11 + $0x90] sm:$0xff] (%p3655_p10), %v1662_v48  ;;  %1665 = vst [vmem:[%s3455_s11 + $0x98] sm:$0xff] (%p3655_p10), %v1664_v27  ;;  %v1696_v4 = vld [vmem:[%s3253_s27 + $0xd0] sm:$0xff] (%p3655_p10) }
 0x247   : > { %1585 = vst [vmem:[%s3253_s27 + $0x58] sm:$0xff] %v1537_v45  ;;  %1609 = vst [vmem:[%s3253_s27 + $0x118] sm:$0xff] %v1561_v57  ;;  %v1468_v51 = vadd.f32 %v1467_v14, %v1323_v52  ;;  %v1508_v16 = vadd.f32 %v1507_v33, %v1363_v25  ;;  %v1670_v2 = vld [vmem:[%s3253_s27 + $0x68] sm:$0xff] (%p3655_p10)  ;;  %v1674_v52 = vld [vmem:[%s3253_s27 + $0x78] sm:$0xff] (%p3655_p10) }
 0x248   : > { %v1469_v13 = vpop.f32.mrf.mxu0  ;;  %v1509_v39 = vpop.f32.mrf.mxu1  ;;  %1655 = vst [vmem:[%s3455_s11 + $0x40] sm:$0xff] (%p3655_p10), %v1654_v5  ;;  %1669 = vst [vmem:[%s3455_s11 + $0xc0] sm:$0xff] (%p3655_p10), %v1668_v38  ;;  %v1680_v45 = vld [vmem:[%s3253_s27 + $0x90] sm:$0xff] (%p3655_p10)  ;;  %v1682_v57 = vld [vmem:[%s3253_s27 + $0x98] sm:$0xff] (%p3655_p10) }
 0x249   : > { %v1540_v61 = vmax.f32 %v1468_v51, 0.0  ;;  %v1564_v21 = vmax.f32 %v1508_v16, 0.0  ;;  %1671 = vst [vmem:[%s3455_s11 + $0xc8] sm:$0xff] (%p3655_p10), %v1670_v2  ;;  %1675 = vst [vmem:[%s3455_s11 + $0xf0] sm:$0xff] (%p3655_p10), %v1674_v52  ;;  %v1686_v33 = vld [vmem:[%s3253_s27 + $0xa8] sm:$0xff] (%p3655_p10)  ;;  %v1688_v51 = vld [vmem:[%s3253_s27 + $0xb0] sm:$0xff] (%p3655_p10) }
 0x24a   : > { %v1472_v53 = vpop.f32.mrf.mxu0  ;;  %v1512_v1 = vpop.f32.mrf.mxu1  ;;  %v1660_v8 = vld [vmem:[%s3253_s27 + $0x40] sm:$0xff] (%p3655_p10)  ;;  %1681 = vst [vmem:[%s3455_s11 + $0x120] sm:$0xff] (%p3655_p10), %v1680_v45  ;;  %1683 = vst [vmem:[%s3455_s11 + $0x128] sm:$0xff] (%p3655_p10), %v1682_v57  ;;  %v1694_v39 = vld [vmem:[%s3253_s27 + $0xc8] sm:$0xff] (%p3655_p10) }
 0x24b   : > { %1588 = vst [vmem:[%s3253_s27 + $0x70] sm:$0xff] %v1540_v61  ;;  %1612 = vst [vmem:[%s3253_s27 + $0x130] sm:$0xff] %v1564_v21  ;;  %v1473_v62 = vadd.f32 %v1472_v53, %v1328_v42  ;;  %v1513_v34 = vadd.f32 %v1512_v1, %v1368_v55  ;;  %v1692_v13 = vld [vmem:[%s3253_s27 + $0xc0] sm:$0xff] (%p3655_p10)  ;;  %v1698_v42 = vld [vmem:[%s3253_s27 + $0xd8] sm:$0xff] (%p3655_p10) }
 0x24c   : > { %v1474_v22 = vpop.f32.mrf.mxu0  ;;  %v1514_v50 = vpop.f32.mrf.mxu1  ;;  %1661 = vst [vmem:[%s3455_s11 + $0x70] sm:$0xff] (%p3655_p10), %v1660_v8  ;;  %1687 = vst [vmem:[%s3455_s11 + $0x150] sm:$0xff] (%p3655_p10), %v1686_v33  ;;  %v1702_v55 = vld [vmem:[%s3253_s27 + $0xe8] sm:$0xff] (%p3655_p10)  ;;  %v1704_v61 = vld [vmem:[%s3253_s27 + $0xf0] sm:$0xff] (%p3655_p10) }
 0x24d   : > { %v1543_v46 = vmax.f32 %v1473_v62, 0.0  ;;  %v1567_v56 = vmax.f32 %v1513_v34, 0.0  ;;  %1689 = vst [vmem:[%s3455_s11 + $0x158] sm:$0xff] (%p3655_p10), %v1688_v51  ;;  %1693 = vst [vmem:[%s3455_s11 + $0x180] sm:$0xff] (%p3655_p10), %v1692_v13  ;;  %v1706_v21 = vld [vmem:[%s3253_s27 + $0xf8] sm:$0xff] (%p3655_p10)  ;;  %v1708_v53 = vld [vmem:[%s3253_s27 + $0x100] sm:$0xff] (%p3655_p10) }
 0x24e   : > { %v1477_v43 = vpop.f32.mrf.mxu0  ;;  %v1517_v36 = vpop.f32.mrf.mxu1  ;;  %v1666_v28 = vld [vmem:[%s3253_s27 + $0x58] sm:$0xff] (%p3655_p10)  ;;  %1695 = vst [vmem:[%s3455_s11 + $0x188] sm:$0xff] (%p3655_p10), %v1694_v39  ;;  %1697 = vst [vmem:[%s3455_s11 + $0x190] sm:$0xff] (%p3655_p10), %v1696_v4  ;;  %v1710_v1 = vld [vmem:[%s3253_s27 + $0x108] sm:$0xff] (%p3655_p10) }
 0x24f   : > { %1591 = vst [vmem:[%s3253_s27 + $0x88] sm:$0xff] %v1543_v46  ;;  %1615 = vst [vmem:[%s3253_s27 + $0x148] sm:$0xff] %v1567_v56  ;;  %v1478_v23 = vadd.f32 %v1477_v43, %v1333_v41  ;;  %v1518_v60 = vadd.f32 %v1517_v36, %v1373_v7  ;;  %v1712_v62 = vld [vmem:[%s3253_s27 + $0x110] sm:$0xff] (%p3655_p10)  ;;  %v1714_v34 = vld [vmem:[%s3253_s27 + $0x118] sm:$0xff] (%p3655_p10) }
 0x250   : > { %v1479_v63 = vpop.f32.mrf.mxu0  ;;  %v1519_v24 = vpop.f32.mrf.mxu1  ;;  %1667 = vst [vmem:[%s3455_s11 + $0xa0] sm:$0xff] (%p3655_p10), %v1666_v28  ;;  %1699 = vst [vmem:[%s3455_s11 + $0x1b0] sm:$0xff] (%p3655_p10), %v1698_v42  ;;  %v1716_v22 = vld [vmem:[%s3253_s27 + $0x120] sm:$0xff] (%p3655_p10)  ;;  %v1718_v50 = vld [vmem:[%s3253_s27 + $0x128] sm:$0xff] (%p3655_p10) }
 0x251   : > { %v1546_v58 = vmax.f32 %v1478_v23, 0.0  ;;  %v1570_v32 = vmax.f32 %v1518_v60, 0.0  ;;  %1703 = vst [vmem:[%s3455_s11 + $0x1c0] sm:$0xff] (%p3655_p10), %v1702_v55  ;;  %1705 = vst [vmem:[%s3455_s11 + $0x1e0] sm:$0xff] (%p3655_p10), %v1704_v61  ;;  %v1722_v41 = vld [vmem:[%s3253_s27 + $0x138] sm:$0xff] (%p3655_p10)  ;;  %v1728_v46 = vld [vmem:[%s3253_s27 + $0x150] sm:$0xff] (%p3655_p10) }
 0x252   : > { %v1482_v47 = vpop.f32.mrf.mxu0  ;;  %v1522_v6 = vpop.f32.mrf.mxu1  ;;  %v1672_v35 = vld [vmem:[%s3253_s27 + $0x70] sm:$0xff] (%p3655_p10)  ;;  %1707 = vst [vmem:[%s3455_s11 + $0x1e8] sm:$0xff] (%p3655_p10), %v1706_v21  ;;  %1709 = vst [vmem:[%s3455_s11 + $0x1f0] sm:$0xff] (%p3655_p10), %v1708_v53  ;;  %v1730_v56 = vld [vmem:[%s3253_s27 + $0x158] sm:$0xff] (%p3655_p10) }
 0x253   : > { %1594 = vst [vmem:[%s3253_s27 + $0xa0] sm:$0xff] %v1546_v58  ;;  %1618 = vst [vmem:[%s3253_s27 + $0x160] sm:$0xff] %v1570_v32  ;;  %v1483_v19 = vadd.f32 %v1482_v47, %v1338_v59  ;;  %v1523_v10 = vadd.f32 %v1522_v6, %v1378_v30  ;;  %1628 = sbr.rel (!%p3655_p10) target bundleno = 609 (0x261), region = 40  ;;  %v1720_v9 = vld [vmem:[%s3253_s27 + $0x130] sm:$0xff] (%p3655_p10)  ;;  %v1734_v36 = vld [vmem:[%s3253_s27 + $0x168] sm:$0xff] (%p3655_p10) }
 0x254   : > { %v1484_v0 = vpop.f32.mrf.mxu0  ;;  %v1524_v31 = vpop.f32.mrf.mxu1  ;;  %1673 = vst [vmem:[%s3455_s11 + $0xd0] sm:$0xff] (%p3655_p10), %v1672_v35  ;;  %1711 = vst [vmem:[%s3455_s11 + $0x210] sm:$0xff] (%p3655_p10), %v1710_v1  ;;  %v1736_v23 = vld [vmem:[%s3253_s27 + $0x170] sm:$0xff] (%p3655_p10) }
 0x255   : > { %v1549_v44 = vmax.f32 %v1483_v19, 0.0  ;;  %v1573_v3 = vmax.f32 %v1523_v10, 0.0  ;;  %1713 = vst [vmem:[%s3455_s11 + $0x218] sm:$0xff] (%p3655_p10), %v1712_v62  ;;  %1715 = vst [vmem:[%s3455_s11 + $0x220] sm:$0xff] (%p3655_p10), %v1714_v34 }
 0x256   : > { %v1678_v25 = vld [vmem:[%s3253_s27 + $0x88] sm:$0xff] (%p3655_p10)  ;;  %1717 = vst [vmem:[%s3455_s11 + $0x240] sm:$0xff] (%p3655_p10), %v1716_v22  ;;  %1719 = vst [vmem:[%s3455_s11 + $0x248] sm:$0xff] (%p3655_p10), %v1718_v50 }
 0x257   : > { %1597 = vst [vmem:[%s3253_s27 + $0xb8] sm:$0xff] %v1549_v44  ;;  %1621 = vst [vmem:[%s3253_s27 + $0x178] sm:$0xff] %v1573_v3  ;;  %v1726_v7 = vld [vmem:[%s3253_s27 + $0x148] sm:$0xff] (%p3655_p10) }
 0x258   : > { %1679 = vst [vmem:[%s3455_s11 + $0x100] sm:$0xff] %v1678_v25  ;;  %1721 = vst [vmem:[%s3455_s11 + $0x250] sm:$0xff] %v1720_v9 }
 0x259   : > { %1723 = vst [vmem:[%s3455_s11 + $0x270] sm:$0xff] %v1722_v41  ;;  %1727 = vst [vmem:[%s3455_s11 + $0x280] sm:$0xff] %v1726_v7 }
 0x25a   : > { %v1684_v14 = vld [vmem:[%s3253_s27 + $0xa0] sm:$0xff]  ;;  %1729 = vst [vmem:[%s3455_s11 + $0x2a0] sm:$0xff] %v1728_v46  ;;  %1731 = vst [vmem:[%s3455_s11 + $0x2a8] sm:$0xff] %v1730_v56 }
 0x25b   : > { %1685 = vst [vmem:[%s3455_s11 + $0x130] sm:$0xff] %v1684_v14  ;;  %v1732_v43 = vld [vmem:[%s3253_s27 + $0x160] sm:$0xff]  ;;  %1735 = vst [vmem:[%s3455_s11 + $0x2d0] sm:$0xff] %v1734_v36 }
 0x25c   : > { %1733 = vst [vmem:[%s3455_s11 + $0x2b0] sm:$0xff] %v1732_v43  ;;  %1737 = vst [vmem:[%s3455_s11 + $0x2d8] sm:$0xff] %v1736_v23 }
 0x25e   : > { %v1690_v16 = vld [vmem:[%s3253_s27 + $0xb8] sm:$0xff] }
 0x25f   : > { %1691 = vst [vmem:[%s3455_s11 + $0x160] sm:$0xff] %v1690_v16  ;;  %v1738_v60 = vld [vmem:[%s3253_s27 + $0x178] sm:$0xff] }
 0x260   : > { %1739 = vst [vmem:[%s3455_s11 + $0x2e0] sm:$0xff] %v1738_v60 }
 0x261 PF: > { %p13_p2 = scmp.ge.s32.totalorder %s2011_s17, 4   ;;  %s3656_s12 = smov %s1956_s13 }
 0x262   : > { %s3657_s13 = smov %s1960_s14  ;;  %s3658_s14 = smov %s2021_s20 }
 0x263   : > { %s3659_s15 = smov %s2011_s17  ;;  %15 = sbr.rel (!%p13_p2) target bundleno = 3 (0x3), region = 98 }
 0x268   :  { %1755 = vsyncpa [#allocation3], 1 }
 0x269   :  { %1757 = vsyncpa [#allocation3 + $0x1], 1 }

</bundles_post_ra>
